<compile_context>
chip_gen: v7x
topology: tpu7x:2x2x1
jax: 0.10.0
libtpu: 0.0.40
codegen_flags: <defaults>
</compile_context>

<pallas_src>
import jax
import jax.numpy as jnp
from jax.experimental import pallas as pl
from jax.experimental.pallas import tpu as pltpu


# ---------------------------------------------------------------------------
# Pallas kernels
# ---------------------------------------------------------------------------

def _conv_relu_pool_kernel(p_ref, w_ref, b_ref, o_ref):
    """relu(maxpool2x2(conv + b)) for one conv layer.

    p_ref: (4, K, M)  im2col patches grouped by 2x2 pool quadrant,
                      K = C*KH*KW, M = B*PH*PW (pooled spatial, lane-dense).
    w_ref: (OC, K)    conv weight as a matrix ((c, kh, kw) ordering).
    b_ref: (OC, 1)    bias.
    o_ref: (OC, M)    pooled + activated output (lane dim = large spatial axis).
    """
    w = w_ref[...]
    m = jnp.dot(w, p_ref[0], preferred_element_type=jnp.float32)
    for q in range(1, p_ref.shape[0]):          # max over the 2x2 pool window
        m = jnp.maximum(m, jnp.dot(w, p_ref[q], preferred_element_type=jnp.float32))
    # relu(max(conv) + b) == maxpool(relu(conv + b)): bias is per-row, relu monotone.
    o_ref[...] = jnp.maximum(m + b_ref[...], 0.0)


def _conv_pool_fc_kernel(p_ref, w2_ref, b2_ref, w1r_ref, b1_ref,
                         fw2_ref, fb2_ref, fw3_ref, fb3_ref, o_ref):
    """conv2 + ReLU + 2x2 max-pool fused with fc1 -> ReLU -> fc2 -> ReLU -> fc3.

    p_ref : (4, S*B, K2)  conv2 patches, quadrant-grouped; rows ordered (s, b),
                          s = ph*PW + pw is the pooled spatial index.
    w2_ref: (K2, OC2)     conv2 weight (pre-transposed at init).
    b2_ref: (1, OC2)
    w1r_ref: (S, OC2, N1) fc1 weight re-ordered at init so slab s matches the
                          torch.flatten(x, 1) features (c, h=s//PW, w=s%PW).
    b1_ref: (1, N1)   fw2_ref: (N1, N2)   fb2_ref: (1, N2)
    fw3_ref: (N2, N3) fb3_ref: (1, N3)    o_ref: (B, N3)
    """
    w2 = w2_ref[...]
    m = jnp.dot(p_ref[0], w2, preferred_element_type=jnp.float32)
    for q in range(1, p_ref.shape[0]):
        m = jnp.maximum(m, jnp.dot(p_ref[q], w2, preferred_element_type=jnp.float32))
    pooled = jnp.maximum(m + b2_ref[...], 0.0)        # (S*B, OC2), rows = (s, b)

    S = w1r_ref.shape[0]
    B = o_ref.shape[0]
    N1 = w1r_ref.shape[2]
    # fc1: accumulate over the S pooled spatial positions; everything stays in
    # registers/VMEM (no flatten reshape, no HBM round-trip).
    acc = jnp.zeros((B, N1), jnp.float32)
    for s in range(S):
        acc = acc + jnp.dot(pooled[s * B:(s + 1) * B, :], w1r_ref[s],
                            preferred_element_type=jnp.float32)
    y = jnp.maximum(acc + b1_ref[...], 0.0)                                     # fc1+ReLU
    y = jnp.maximum(jnp.dot(y, fw2_ref[...], preferred_element_type=jnp.float32)
                    + fb2_ref[...], 0.0)                                        # fc2+ReLU
    o_ref[...] = (jnp.dot(y, fw3_ref[...], preferred_element_type=jnp.float32)
                  + fb3_ref[...])                                               # fc3


# ---------------------------------------------------------------------------
# pallas_call wrappers
# ---------------------------------------------------------------------------

def _conv_relu_pool(patches, w, b):
    Q, K, M = patches.shape
    OC = w.shape[0]
    return pl.pallas_call(
        _conv_relu_pool_kernel,
        grid=(1,),  # whole problem fits VMEM; tile M + "parallel" if batch grows (v7x 2 TCs)
        in_specs=[
            pl.BlockSpec((Q, K, M), lambda i: (0, 0, 0)),
            pl.BlockSpec((OC, K), lambda i: (0, 0)),
            pl.BlockSpec((OC, 1), lambda i: (0, 0)),
        ],
        out_specs=pl.BlockSpec((OC, M), lambda i: (0, 0)),
        out_shape=jax.ShapeDtypeStruct((OC, M), jnp.float32),
        compiler_params=pltpu.CompilerParams(dimension_semantics=("arbitrary",)),
    )(patches, w, b)


def _conv_pool_fc_head(patches, pp):
    Q, M2, K2 = patches.shape
    B = M2 // pp["fc1_wr"].shape[0]
    N3 = pp["fc3_w"].shape[1]

    def full(a):  # full-array block (no per-call padding needed)
        return pl.BlockSpec(a.shape, lambda i: (0,) * a.ndim)

    args = (patches, pp["conv2_wm"], pp["conv2_b"], pp["fc1_wr"], pp["fc1_b"],
            pp["fc2_w"], pp["fc2_b"], pp["fc3_w"], pp["fc3_b"])
    return pl.pallas_call(
        _conv_pool_fc_kernel,
        grid=(1,),
        in_specs=[full(a) for a in args],
        out_specs=pl.BlockSpec((B, N3), lambda i: (0, 0)),
        out_shape=jax.ShapeDtypeStruct((B, N3), jnp.float32),
        compiler_params=pltpu.CompilerParams(dimension_semantics=("arbitrary",)),
    )(*args)


# ---------------------------------------------------------------------------
# XLA glue: pool-quadrant-grouped im2col (strided slices only)
# ---------------------------------------------------------------------------

def _im2col_pool_quadrants(x, K):
    """x: (B, C, H, W) -> (4, C*K*K, B, PH, PW) with
       out[2*di+dj, c*K*K + kh*K + kw, b, ph, pw] = x[b, c, 2*ph+di+kh, 2*pw+dj+kw].
    Quadrant q's slab is the im2col matrix of conv outputs landing in pool cell
    (ph, pw) at offset (di, dj), so pooling becomes an in-kernel max over q."""
    B, C, H, W = x.shape
    OH, OW = H - K + 1, W - K + 1
    PH, PW = OH // 2, OW // 2
    taps = jnp.stack([x[:, :, kh:kh + OH, kw:kw + OW]
                      for kh in range(K) for kw in range(K)], axis=0)   # (K*K,B,C,OH,OW)
    taps = taps.transpose(2, 0, 1, 3, 4)                                # (C,K*K,B,OH,OW)
    quads = [taps[:, :, :, di:di + 2 * PH:2, dj:dj + 2 * PW:2]          # (C,K*K,B,PH,PW)
             for di in range(2) for dj in range(2)]
    return jnp.stack(quads, axis=0).reshape(4, C * K * K, B, PH, PW)


# ---------------------------------------------------------------------------
# Parameters
# ---------------------------------------------------------------------------

def init_params(key, num_classes=100):
    """Raw parameters in the PyTorch layout."""
    ks = jax.random.split(key, 10)
    s = 0.1
    return {
        "conv1_w": s * jax.random.normal(ks[0], (6, 3, 5, 5), jnp.float32),
        "conv1_b": s * jax.random.normal(ks[1], (6,), jnp.float32),
        "conv2_w": s * jax.random.normal(ks[2], (16, 6, 5, 5), jnp.float32),
        "conv2_b": s * jax.random.normal(ks[3], (16,), jnp.float32),
        "fc1_w": s * jax.random.normal(ks[4], (400, 256), jnp.float32),
        "fc1_b": s * jax.random.normal(ks[5], (256,), jnp.float32),
        "fc2_w": s * jax.random.normal(ks[6], (256, 128), jnp.float32),
        "fc2_b": s * jax.random.normal(ks[7], (128,), jnp.float32),
        "fc3_w": s * jax.random.normal(ks[8], (128, num_classes), jnp.float32),
        "fc3_b": s * jax.random.normal(ks[9], (num_classes,), jnp.float32),
    }


def prepare_params(p):
    """One-time weight reshape/transpose/reorder into kernel-ready layouts
    (perf review: hoist all layout/padding work out of the forward pass)."""
    oc1 = p["conv1_w"].shape[0]
    oc2 = p["conv2_w"].shape[0]
    n1 = p["fc1_w"].shape[1]
    s2 = p["fc1_w"].shape[0] // oc2              # pooled spatial positions (5*5 = 25)
    # fc1 rows are (c, h, w) by torch.flatten; regroup to (s=(h,w), c) slabs.
    fc1_r = p["fc1_w"].reshape(oc2, s2, n1).transpose(1, 0, 2)     # (25, 16, 256)
    return {
        "conv1_wm": p["conv1_w"].reshape(oc1, -1),                 # (6, 75)   (c,kh,kw)
        "conv1_b": p["conv1_b"].reshape(-1, 1),                    # (6, 1)
        "conv2_wm": p["conv2_w"].reshape(oc2, -1).T,               # (150, 16)
        "conv2_b": p["conv2_b"].reshape(1, -1),                    # (1, 16)
        "fc1_wr": fc1_r,                                           # (25, 16, 256)
        "fc1_b": p["fc1_b"].reshape(1, -1),
        "fc2_w": p["fc2_w"],
        "fc2_b": p["fc2_b"].reshape(1, -1),
        "fc3_w": p["fc3_w"],
        "fc3_b": p["fc3_b"].reshape(1, -1),
    }


# ---------------------------------------------------------------------------
# LeNet forward
# ---------------------------------------------------------------------------

def lenet_forward(x, pp):
    """Returns (logits, shape_dict) matching the PyTorch module."""
    B = x.shape[0]
    shape_dict = {}

    # ---- stage 1: conv1 + ReLU + 2x2 max-pool (one Pallas kernel) ----
    pq1 = _im2col_pool_quadrants(x, 5)                   # (4, 75, B, 14, 14)
    _, K1, _, PH1, PW1 = pq1.shape
    patches1 = pq1.reshape(4, K1, B * PH1 * PW1)         # lane dim = spatial
    OC1 = pp["conv1_wm"].shape[0]
    out1 = _conv_relu_pool(patches1, pp["conv1_wm"], pp["conv1_b"])   # (6, B*14*14)
    pooled1 = out1.reshape(OC1, B, PH1, PW1).transpose(1, 0, 2, 3)    # NCHW (B,6,14,14)
    shape_dict[1] = list(pooled1.shape)

    # ---- stage 2: conv2 + ReLU + pool + fc1..fc3 (one Pallas kernel) ----
    pq2 = _im2col_pool_quadrants(pooled1, 5)             # (4, 150, B, 5, 5)
    _, K2, _, PH2, PW2 = pq2.shape
    patches2 = pq2.transpose(0, 3, 4, 2, 1).reshape(4, PH2 * PW2 * B, K2)  # rows = (s, b)
    logits = _conv_pool_fc_head(patches2, pp)            # (B, num_classes)

    OC2 = pp["conv2_b"].shape[1]
    shape_dict[2] = [B, OC2, PH2, PW2]
    shape_dict[3] = [B, OC2 * PH2 * PW2]
    shape_dict[4] = [B, pp["fc1_b"].shape[1]]
    shape_dict[5] = [B, pp["fc2_b"].shape[1]]
    shape_dict[6] = [B, pp["fc3_b"].shape[1]]
    return logits, shape_dict


# ---------------------------------------------------------------------------
# Pure-JAX reference (validation only)
# ---------------------------------------------------------------------------

def lenet_reference(x, p):
    def conv(t, w, b):
        y = jax.lax.conv_general_dilated(
            t, w, window_strides=(1, 1), padding="VALID",
            dimension_numbers=("NCHW", "OIHW", "NCHW"))
        return y + b.reshape(1, -1, 1, 1)

    def pool(t):  # 2x2/2 max pool on even spatial dims
        return jnp.maximum(jnp.maximum(t[:, :, ::2, ::2], t[:, :, ::2, 1::2]),
                           jnp.maximum(t[:, :, 1::2, ::2], t[:, :, 1::2, 1::2]))

    out = pool(jax.nn.relu(conv(x, p["conv1_w"], p["conv1_b"])))
    out = pool(jax.nn.relu(conv(out, p["conv2_w"], p["conv2_b"])))
    out = out.reshape(out.shape[0], -1)
    out = jax.nn.relu(out @ p["fc1_w"] + p["fc1_b"])
    out = jax.nn.relu(out @ p["fc2_w"] + p["fc2_b"])
    return out @ p["fc3_w"] + p["fc3_b"]


if __name__ == "__main__":
    key = jax.random.PRNGKey(0)
    k_x, k_p = jax.random.split(key)
    # input must be (B, 3, 32, 32) so flatten yields 400 features (16*5*5)
    x = jax.random.normal(k_x, (2, 3, 32, 32), jnp.float32)
    raw = init_params(k_p, num_classes=100)
    pp = prepare_params(raw)

    fwd = jax.jit(lenet_forward)
    out, shape_dict = fwd(x, pp)
    out = jax.block_until_ready(out)
    shape_dict = jax.tree_util.tree_map(int, shape_dict)

    assert out.shape == (2, 100), out.shape
    assert shape_dict == {1: [2, 6, 14, 14], 2: [2, 16, 5, 5], 3: [2, 400],
                          4: [2, 256], 5: [2, 128], 6: [2, 100]}, shape_dict

    # numerical check against a pure-JAX reference of the PyTorch module
    ref = lenet_reference(x, raw)
    max_err = float(jnp.max(jnp.abs(out - ref)))
    assert max_err < 1e-1, f"max abs error vs reference: {max_err}"

    print("KERNEL_OK")
</pallas_src>

<mosaic_0001>
module attributes {stable_mosaic.version = 11 : i64} {
  func.func @_conv_relu_pool_kernel(%arg0: i32, %arg1: memref<4x75x392xf32, #tpu.memory_space<vmem>>, %arg2: memref<6x75xf32, #tpu.memory_space<vmem>>, %arg3: memref<6x1xf32, #tpu.memory_space<vmem>>, %arg4: memref<6x392xf32, #tpu.memory_space<vmem>>) attributes {dimension_semantics = [#tpu.dimension_semantics<arbitrary>], iteration_bounds = array<i64: 1>, scalar_prefetch = 0 : i64, scratch_operands = 0 : i64, tpu.core_type = #tpu.core_type<tc>, window_params = [{pipeline_mode = #tpu.pipeline_mode<synchronous>, transform_indices = @transform_0, window_bounds = array<i64: 4, 75, 392>}, {pipeline_mode = #tpu.pipeline_mode<synchronous>, transform_indices = @transform_1, window_bounds = array<i64: 6, 75>}, {pipeline_mode = #tpu.pipeline_mode<synchronous>, transform_indices = @transform_2, window_bounds = array<i64: 6, 1>}, {pipeline_mode = #tpu.pipeline_mode<synchronous>, transform_indices = @transform_3, window_bounds = array<i64: 6, 392>}]} {
    %c0 = arith.constant 0 : index
    %c0_0 = arith.constant 0 : index
    %0 = vector.load %arg2[%c0, %c0_0] : memref<6x75xf32, #tpu.memory_space<vmem>>, vector<6x75xf32>
    %c0_1 = arith.constant 0 : index
    %c0_2 = arith.constant 0 : index
    %c0_3 = arith.constant 0 : index
    %1 = vector.load %arg1[%c0_1, %c0_2, %c0_3] : memref<4x75x392xf32, #tpu.memory_space<vmem>>, vector<1x75x392xf32>
    %2 = vector.shape_cast %1 : vector<1x75x392xf32> to vector<75x392xf32>
    %cst = arith.constant dense<0.000000e+00> : vector<6x392xf32>
    %3 = tpu.matmul %0, %2, %cst {dimension_numbers = #tpu.dot_dimension_numbers<[1], [0], [0], [1], [0, 0, 1, 1], [], []>} : vector<6x75xf32>, vector<75x392xf32>, vector<6x392xf32> -> vector<6x392xf32>
    %c1 = arith.constant 1 : index
    %c0_4 = arith.constant 0 : index
    %c0_5 = arith.constant 0 : index
    %4 = vector.load %arg1[%c1, %c0_4, %c0_5] : memref<4x75x392xf32, #tpu.memory_space<vmem>>, vector<1x75x392xf32>
    %5 = vector.shape_cast %4 : vector<1x75x392xf32> to vector<75x392xf32>
    %cst_6 = arith.constant dense<0.000000e+00> : vector<6x392xf32>
    %6 = tpu.matmul %0, %5, %cst_6 {dimension_numbers = #tpu.dot_dimension_numbers<[1], [0], [0], [1], [0, 0, 1, 1], [], []>} : vector<6x75xf32>, vector<75x392xf32>, vector<6x392xf32> -> vector<6x392xf32>
    %7 = arith.maximumf %3, %6 : vector<6x392xf32>
    %c2 = arith.constant 2 : index
    %c0_7 = arith.constant 0 : index
    %c0_8 = arith.constant 0 : index
    %8 = vector.load %arg1[%c2, %c0_7, %c0_8] : memref<4x75x392xf32, #tpu.memory_space<vmem>>, vector<1x75x392xf32>
    %9 = vector.shape_cast %8 : vector<1x75x392xf32> to vector<75x392xf32>
    %cst_9 = arith.constant dense<0.000000e+00> : vector<6x392xf32>
    %10 = tpu.matmul %0, %9, %cst_9 {dimension_numbers = #tpu.dot_dimension_numbers<[1], [0], [0], [1], [0, 0, 1, 1], [], []>} : vector<6x75xf32>, vector<75x392xf32>, vector<6x392xf32> -> vector<6x392xf32>
    %11 = arith.maximumf %7, %10 : vector<6x392xf32>
    %c3 = arith.constant 3 : index
    %c0_10 = arith.constant 0 : index
    %c0_11 = arith.constant 0 : index
    %12 = vector.load %arg1[%c3, %c0_10, %c0_11] : memref<4x75x392xf32, #tpu.memory_space<vmem>>, vector<1x75x392xf32>
    %13 = vector.shape_cast %12 : vector<1x75x392xf32> to vector<75x392xf32>
    %cst_12 = arith.constant dense<0.000000e+00> : vector<6x392xf32>
    %14 = tpu.matmul %0, %13, %cst_12 {dimension_numbers = #tpu.dot_dimension_numbers<[1], [0], [0], [1], [0, 0, 1, 1], [], []>} : vector<6x75xf32>, vector<75x392xf32>, vector<6x392xf32> -> vector<6x392xf32>
    %15 = arith.maximumf %11, %14 : vector<6x392xf32>
    %c0_13 = arith.constant 0 : index
    %c0_14 = arith.constant 0 : index
    %16 = vector.load %arg3[%c0_13, %c0_14] : memref<6x1xf32, #tpu.memory_space<vmem>>, vector<6x1xf32>
    %17 = vector.broadcast %16 : vector<6x1xf32> to vector<6x392xf32>
    %18 = arith.addf %15, %17 : vector<6x392xf32>
    %cst_15 = arith.constant 0.000000e+00 : f32
    %19 = vector.broadcast %cst_15 : f32 to vector<6x392xf32>
    %20 = arith.maximumf %18, %19 : vector<6x392xf32>
    %c0_16 = arith.constant 0 : index
    %c0_17 = arith.constant 0 : index
    %21 = vector.load %arg4[%c0_16, %c0_17] : memref<6x392xf32, #tpu.memory_space<vmem>>, vector<6x392xf32>
    tpu.vector_store %arg4[%c0_16, %c0_17], %20 {strides = array<i32>} : memref<6x392xf32, #tpu.memory_space<vmem>>, vector<6x392xf32>,
    return
  }
  func.func @transform_0(%arg0: i32) -> (i32, i32, i32) {
    %c0_i32 = arith.constant 0 : i32
    %c0_i32_0 = arith.constant 0 : i32
    %c0_i32_1 = arith.constant 0 : i32
    %c0_i32_2 = arith.constant 0 : i32
    return %c0_i32, %c0_i32_0, %c0_i32_1 : i32, i32, i32
  }
  func.func @transform_1(%arg0: i32) -> (i32, i32) {
    %c0_i32 = arith.constant 0 : i32
    %c0_i32_0 = arith.constant 0 : i32
    %c0_i32_1 = arith.constant 0 : i32
    return %c0_i32, %c0_i32_0 : i32, i32
  }
  func.func @transform_2(%arg0: i32) -> (i32, i32) {
    %c0_i32 = arith.constant 0 : i32
    %c0_i32_0 = arith.constant 0 : i32
    %c0_i32_1 = arith.constant 0 : i32
    return %c0_i32, %c0_i32_0 : i32, i32
  }
  func.func @transform_3(%arg0: i32) -> (i32, i32) {
    %c0_i32 = arith.constant 0 : i32
    %c0_i32_0 = arith.constant 0 : i32
    %c0_i32_1 = arith.constant 0 : i32
    return %c0_i32, %c0_i32_0 : i32, i32
  }
}

module attributes {stable_mosaic.version = 11 : i64} {
  func.func @_conv_pool_fc_kernel(%arg0: i32, %arg1: memref<4x50x150xf32, #tpu.memory_space<vmem>>, %arg2: memref<150x16xf32, #tpu.memory_space<vmem>>, %arg3: memref<1x16xf32, #tpu.memory_space<vmem>>, %arg4: memref<25x16x256xf32, #tpu.memory_space<vmem>>, %arg5: memref<1x256xf32, #tpu.memory_space<vmem>>, %arg6: memref<256x128xf32, #tpu.memory_space<vmem>>, %arg7: memref<1x128xf32, #tpu.memory_space<vmem>>, %arg8: memref<128x100xf32, #tpu.memory_space<vmem>>, %arg9: memref<1x100xf32, #tpu.memory_space<vmem>>, %arg10: memref<2x100xf32, #tpu.memory_space<vmem>>) attributes {dimension_semantics = [#tpu.dimension_semantics<arbitrary>], iteration_bounds = array<i64: 1>, scalar_prefetch = 0 : i64, scratch_operands = 0 : i64, tpu.core_type = #tpu.core_type<tc>, window_params = [{pipeline_mode = #tpu.pipeline_mode<synchronous>, transform_indices = @transform_0, window_bounds = array<i64: 4, 50, 150>}, {pipeline_mode = #tpu.pipeline_mode<synchronous>, transform_indices = @transform_1, window_bounds = array<i64: 150, 16>}, {pipeline_mode = #tpu.pipeline_mode<synchronous>, transform_indices = @transform_2, window_bounds = array<i64: 1, 16>}, {pipeline_mode = #tpu.pipeline_mode<synchronous>, transform_indices = @transform_3, window_bounds = array<i64: 25, 16, 256>}, {pipeline_mode = #tpu.pipeline_mode<synchronous>, transform_indices = @transform_4, window_bounds = array<i64: 1, 256>}, {pipeline_mode = #tpu.pipeline_mode<synchronous>, transform_indices = @transform_5, window_bounds = array<i64: 256, 128>}, {pipeline_mode = #tpu.pipeline_mode<synchronous>, transform_indices = @transform_6, window_bounds = array<i64: 1, 128>}, {pipeline_mode = #tpu.pipeline_mode<synchronous>, transform_indices = @transform_7, window_bounds = array<i64: 128, 100>}, {pipeline_mode = #tpu.pipeline_mode<synchronous>, transform_indices = @transform_8, window_bounds = array<i64: 1, 100>}, {pipeline_mode = #tpu.pipeline_mode<synchronous>, transform_indices = @transform_9, window_bounds = array<i64: 2, 100>}]} {
    %c0 = arith.constant 0 : index
    %c0_0 = arith.constant 0 : index
    %0 = vector.load %arg2[%c0, %c0_0] : memref<150x16xf32, #tpu.memory_space<vmem>>, vector<150x16xf32>
    %c0_1 = arith.constant 0 : index
    %c0_2 = arith.constant 0 : index
    %c0_3 = arith.constant 0 : index
    %1 = vector.load %arg1[%c0_1, %c0_2, %c0_3] : memref<4x50x150xf32, #tpu.memory_space<vmem>>, vector<1x50x150xf32>
    %2 = vector.shape_cast %1 : vector<1x50x150xf32> to vector<50x150xf32>
    %cst = arith.constant dense<0.000000e+00> : vector<50x16xf32>
    %3 = tpu.matmul %2, %0, %cst {dimension_numbers = #tpu.dot_dimension_numbers<[1], [0], [0], [1], [0, 0, 1, 1], [], []>} : vector<50x150xf32>, vector<150x16xf32>, vector<50x16xf32> -> vector<50x16xf32>
    %c1 = arith.constant 1 : index
    %c0_4 = arith.constant 0 : index
    %c0_5 = arith.constant 0 : index
    %4 = vector.load %arg1[%c1, %c0_4, %c0_5] : memref<4x50x150xf32, #tpu.memory_space<vmem>>, vector<1x50x150xf32>
    %5 = vector.shape_cast %4 : vector<1x50x150xf32> to vector<50x150xf32>
    %cst_6 = arith.constant dense<0.000000e+00> : vector<50x16xf32>
    %6 = tpu.matmul %5, %0, %cst_6 {dimension_numbers = #tpu.dot_dimension_numbers<[1], [0], [0], [1], [0, 0, 1, 1], [], []>} : vector<50x150xf32>, vector<150x16xf32>, vector<50x16xf32> -> vector<50x16xf32>
    %7 = arith.maximumf %3, %6 : vector<50x16xf32>
    %c2 = arith.constant 2 : index
    %c0_7 = arith.constant 0 : index
    %c0_8 = arith.constant 0 : index
    %8 = vector.load %arg1[%c2, %c0_7, %c0_8] : memref<4x50x150xf32, #tpu.memory_space<vmem>>, vector<1x50x150xf32>
    %9 = vector.shape_cast %8 : vector<1x50x150xf32> to vector<50x150xf32>
    %cst_9 = arith.constant dense<0.000000e+00> : vector<50x16xf32>
    %10 = tpu.matmul %9, %0, %cst_9 {dimension_numbers = #tpu.dot_dimension_numbers<[1], [0], [0], [1], [0, 0, 1, 1], [], []>} : vector<50x150xf32>, vector<150x16xf32>, vector<50x16xf32> -> vector<50x16xf32>
    %11 = arith.maximumf %7, %10 : vector<50x16xf32>
    %c3 = arith.constant 3 : index
    %c0_10 = arith.constant 0 : index
    %c0_11 = arith.constant 0 : index
    %12 = vector.load %arg1[%c3, %c0_10, %c0_11] : memref<4x50x150xf32, #tpu.memory_space<vmem>>, vector<1x50x150xf32>
    %13 = vector.shape_cast %12 : vector<1x50x150xf32> to vector<50x150xf32>
    %cst_12 = arith.constant dense<0.000000e+00> : vector<50x16xf32>
    %14 = tpu.matmul %13, %0, %cst_12 {dimension_numbers = #tpu.dot_dimension_numbers<[1], [0], [0], [1], [0, 0, 1, 1], [], []>} : vector<50x150xf32>, vector<150x16xf32>, vector<50x16xf32> -> vector<50x16xf32>
    %15 = arith.maximumf %11, %14 : vector<50x16xf32>
    %c0_13 = arith.constant 0 : index
    %c0_14 = arith.constant 0 : index
    %16 = vector.load %arg3[%c0_13, %c0_14] : memref<1x16xf32, #tpu.memory_space<vmem>>, vector<1x16xf32>
    %17 = vector.broadcast %16 : vector<1x16xf32> to vector<50x16xf32>
    %18 = arith.addf %15, %17 : vector<50x16xf32>
    %cst_15 = arith.constant 0.000000e+00 : f32
    %19 = vector.broadcast %cst_15 : f32 to vector<50x16xf32>
    %20 = arith.maximumf %18, %19 : vector<50x16xf32>
    %cst_16 = arith.constant 0.000000e+00 : f32
    %21 = vector.broadcast %cst_16 : f32 to vector<2x256xf32>
    %22 = vector.extract_strided_slice %20 {offsets = [0, 0], sizes = [2, 16], strides = [1, 1]} : vector<50x16xf32> to vector<2x16xf32>
    %c0_17 = arith.constant 0 : index
    %c0_18 = arith.constant 0 : index
    %c0_19 = arith.constant 0 : index
    %23 = vector.load %arg4[%c0_17, %c0_18, %c0_19] : memref<25x16x256xf32, #tpu.memory_space<vmem>>, vector<1x16x256xf32>
    %24 = vector.shape_cast %23 : vector<1x16x256xf32> to vector<16x256xf32>
    %cst_20 = arith.constant dense<0.000000e+00> : vector<2x256xf32>
    %25 = tpu.matmul %22, %24, %cst_20 {dimension_numbers = #tpu.dot_dimension_numbers<[1], [0], [0], [1], [0, 0, 1, 1], [], []>} : vector<2x16xf32>, vector<16x256xf32>, vector<2x256xf32> -> vector<2x256xf32>
    %26 = arith.addf %21, %25 : vector<2x256xf32>
    %27 = vector.extract_strided_slice %20 {offsets = [2, 0], sizes = [2, 16], strides = [1, 1]} : vector<50x16xf32> to vector<2x16xf32>
    %c1_21 = arith.constant 1 : index
    %c0_22 = arith.constant 0 : index
    %c0_23 = arith.constant 0 : index
    %28 = vector.load %arg4[%c1_21, %c0_22, %c0_23] : memref<25x16x256xf32, #tpu.memory_space<vmem>>, vector<1x16x256xf32>
    %29 = vector.shape_cast %28 : vector<1x16x256xf32> to vector<16x256xf32>
    %cst_24 = arith.constant dense<0.000000e+00> : vector<2x256xf32>
    %30 = tpu.matmul %27, %29, %cst_24 {dimension_numbers = #tpu.dot_dimension_numbers<[1], [0], [0], [1], [0, 0, 1, 1], [], []>} : vector<2x16xf32>, vector<16x256xf32>, vector<2x256xf32> -> vector<2x256xf32>
    %31 = arith.addf %26, %30 : vector<2x256xf32>
    %32 = vector.extract_strided_slice %20 {offsets = [4, 0], sizes = [2, 16], strides = [1, 1]} : vector<50x16xf32> to vector<2x16xf32>
    %c2_25 = arith.constant 2 : index
    %c0_26 = arith.constant 0 : index
    %c0_27 = arith.constant 0 : index
    %33 = vector.load %arg4[%c2_25, %c0_26, %c0_27] : memref<25x16x256xf32, #tpu.memory_space<vmem>>, vector<1x16x256xf32>
    %34 = vector.shape_cast %33 : vector<1x16x256xf32> to vector<16x256xf32>
    %cst_28 = arith.constant dense<0.000000e+00> : vector<2x256xf32>
    %35 = tpu.matmul %32, %34, %cst_28 {dimension_numbers = #tpu.dot_dimension_numbers<[1], [0], [0], [1], [0, 0, 1, 1], [], []>} : vector<2x16xf32>, vector<16x256xf32>, vector<2x256xf32> -> vector<2x256xf32>
    %36 = arith.addf %31, %35 : vector<2x256xf32>
    %37 = vector.extract_strided_slice %20 {offsets = [6, 0], sizes = [2, 16], strides = [1, 1]} : vector<50x16xf32> to vector<2x16xf32>
    %c3_29 = arith.constant 3 : index
    %c0_30 = arith.constant 0 : index
    %c0_31 = arith.constant 0 : index
    %38 = vector.load %arg4[%c3_29, %c0_30, %c0_31] : memref<25x16x256xf32, #tpu.memory_space<vmem>>, vector<1x16x256xf32>
    %39 = vector.shape_cast %38 : vector<1x16x256xf32> to vector<16x256xf32>
    %cst_32 = arith.constant dense<0.000000e+00> : vector<2x256xf32>
    %40 = tpu.matmul %37, %39, %cst_32 {dimension_numbers = #tpu.dot_dimension_numbers<[1], [0], [0], [1], [0, 0, 1, 1], [], []>} : vector<2x16xf32>, vector<16x256xf32>, vector<2x256xf32> -> vector<2x256xf32>
    %41 = arith.addf %36, %40 : vector<2x256xf32>
    %42 = vector.extract_strided_slice %20 {offsets = [8, 0], sizes = [2, 16], strides = [1, 1]} : vector<50x16xf32> to vector<2x16xf32>
    %c4 = arith.constant 4 : index
    %c0_33 = arith.constant 0 : index
    %c0_34 = arith.constant 0 : index
    %43 = vector.load %arg4[%c4, %c0_33, %c0_34] : memref<25x16x256xf32, #tpu.memory_space<vmem>>, vector<1x16x256xf32>
    %44 = vector.shape_cast %43 : vector<1x16x256xf32> to vector<16x256xf32>
    %cst_35 = arith.constant dense<0.000000e+00> : vector<2x256xf32>
    %45 = tpu.matmul %42, %44, %cst_35 {dimension_numbers = #tpu.dot_dimension_numbers<[1], [0], [0], [1], [0, 0, 1, 1], [], []>} : vector<2x16xf32>, vector<16x256xf32>, vector<2x256xf32> -> vector<2x256xf32>
    %46 = arith.addf %41, %45 : vector<2x256xf32>
    %47 = vector.extract_strided_slice %20 {offsets = [10, 0], sizes = [2, 16], strides = [1, 1]} : vector<50x16xf32> to vector<2x16xf32>
    %c5 = arith.constant 5 : index
    %c0_36 = arith.constant 0 : index
    %c0_37 = arith.constant 0 : index
    %48 = vector.load %arg4[%c5, %c0_36, %c0_37] : memref<25x16x256xf32, #tpu.memory_space<vmem>>, vector<1x16x256xf32>
    %49 = vector.shape_cast %48 : vector<1x16x256xf32> to vector<16x256xf32>
    %cst_38 = arith.constant dense<0.000000e+00> : vector<2x256xf32>
    %50 = tpu.matmul %47, %49, %cst_38 {dimension_numbers = #tpu.dot_dimension_numbers<[1], [0], [0], [1], [0, 0, 1, 1], [], []>} : vector<2x16xf32>, vector<16x256xf32>, vector<2x256xf32> -> vector<2x256xf32>
    %51 = arith.addf %46, %50 : vector<2x256xf32>
    %52 = vector.extract_strided_slice %20 {offsets = [12, 0], sizes = [2, 16], strides = [1, 1]} : vector<50x16xf32> to vector<2x16xf32>
    %c6 = arith.constant 6 : index
    %c0_39 = arith.constant 0 : index
    %c0_40 = arith.constant 0 : index
    %53 = vector.load %arg4[%c6, %c0_39, %c0_40] : memref<25x16x256xf32, #tpu.memory_space<vmem>>, vector<1x16x256xf32>
    %54 = vector.shape_cast %53 : vector<1x16x256xf32> to vector<16x256xf32>
    %cst_41 = arith.constant dense<0.000000e+00> : vector<2x256xf32>
    %55 = tpu.matmul %52, %54, %cst_41 {dimension_numbers = #tpu.dot_dimension_numbers<[1], [0], [0], [1], [0, 0, 1, 1], [], []>} : vector<2x16xf32>, vector<16x256xf32>, vector<2x256xf32> -> vector<2x256xf32>
    %56 = arith.addf %51, %55 : vector<2x256xf32>
    %57 = vector.extract_strided_slice %20 {offsets = [14, 0], sizes = [2, 16], strides = [1, 1]} : vector<50x16xf32> to vector<2x16xf32>
    %c7 = arith.constant 7 : index
    %c0_42 = arith.constant 0 : index
    %c0_43 = arith.constant 0 : index
    %58 = vector.load %arg4[%c7, %c0_42, %c0_43] : memref<25x16x256xf32, #tpu.memory_space<vmem>>, vector<1x16x256xf32>
    %59 = vector.shape_cast %58 : vector<1x16x256xf32> to vector<16x256xf32>
    %cst_44 = arith.constant dense<0.000000e+00> : vector<2x256xf32>
    %60 = tpu.matmul %57, %59, %cst_44 {dimension_numbers = #tpu.dot_dimension_numbers<[1], [0], [0], [1], [0, 0, 1, 1], [], []>} : vector<2x16xf32>, vector<16x256xf32>, vector<2x256xf32> -> vector<2x256xf32>
    %61 = arith.addf %56, %60 : vector<2x256xf32>
    %62 = vector.extract_strided_slice %20 {offsets = [16, 0], sizes = [2, 16], strides = [1, 1]} : vector<50x16xf32> to vector<2x16xf32>
    %c8 = arith.constant 8 : index
    %c0_45 = arith.constant 0 : index
    %c0_46 = arith.constant 0 : index
    %63 = vector.load %arg4[%c8, %c0_45, %c0_46] : memref<25x16x256xf32, #tpu.memory_space<vmem>>, vector<1x16x256xf32>
    %64 = vector.shape_cast %63 : vector<1x16x256xf32> to vector<16x256xf32>
    %cst_47 = arith.constant dense<0.000000e+00> : vector<2x256xf32>
    %65 = tpu.matmul %62, %64, %cst_47 {dimension_numbers = #tpu.dot_dimension_numbers<[1], [0], [0], [1], [0, 0, 1, 1], [], []>} : vector<2x16xf32>, vector<16x256xf32>, vector<2x256xf32> -> vector<2x256xf32>
    %66 = arith.addf %61, %65 : vector<2x256xf32>
    %67 = vector.extract_strided_slice %20 {offsets = [18, 0], sizes = [2, 16], strides = [1, 1]} : vector<50x16xf32> to vector<2x16xf32>
    %c9 = arith.constant 9 : index
    %c0_48 = arith.constant 0 : index
    %c0_49 = arith.constant 0 : index
    %68 = vector.load %arg4[%c9, %c0_48, %c0_49] : memref<25x16x256xf32, #tpu.memory_space<vmem>>, vector<1x16x256xf32>
    %69 = vector.shape_cast %68 : vector<1x16x256xf32> to vector<16x256xf32>
    %cst_50 = arith.constant dense<0.000000e+00> : vector<2x256xf32>
    %70 = tpu.matmul %67, %69, %cst_50 {dimension_numbers = #tpu.dot_dimension_numbers<[1], [0], [0], [1], [0, 0, 1, 1], [], []>} : vector<2x16xf32>, vector<16x256xf32>, vector<2x256xf32> -> vector<2x256xf32>
    %71 = arith.addf %66, %70 : vector<2x256xf32>
    %72 = vector.extract_strided_slice %20 {offsets = [20, 0], sizes = [2, 16], strides = [1, 1]} : vector<50x16xf32> to vector<2x16xf32>
    %c10 = arith.constant 10 : index
    %c0_51 = arith.constant 0 : index
    %c0_52 = arith.constant 0 : index
    %73 = vector.load %arg4[%c10, %c0_51, %c0_52] : memref<25x16x256xf32, #tpu.memory_space<vmem>>, vector<1x16x256xf32>
    %74 = vector.shape_cast %73 : vector<1x16x256xf32> to vector<16x256xf32>
    %cst_53 = arith.constant dense<0.000000e+00> : vector<2x256xf32>
    %75 = tpu.matmul %72, %74, %cst_53 {dimension_numbers = #tpu.dot_dimension_numbers<[1], [0], [0], [1], [0, 0, 1, 1], [], []>} : vector<2x16xf32>, vector<16x256xf32>, vector<2x256xf32> -> vector<2x256xf32>
    %76 = arith.addf %71, %75 : vector<2x256xf32>
    %77 = vector.extract_strided_slice %20 {offsets = [22, 0], sizes = [2, 16], strides = [1, 1]} : vector<50x16xf32> to vector<2x16xf32>
    %c11 = arith.constant 11 : index
    %c0_54 = arith.constant 0 : index
    %c0_55 = arith.constant 0 : index
    %78 = vector.load %arg4[%c11, %c0_54, %c0_55] : memref<25x16x256xf32, #tpu.memory_space<vmem>>, vector<1x16x256xf32>
    %79 = vector.shape_cast %78 : vector<1x16x256xf32> to vector<16x256xf32>
    %cst_56 = arith.constant dense<0.000000e+00> : vector<2x256xf32>
    %80 = tpu.matmul %77, %79, %cst_56 {dimension_numbers = #tpu.dot_dimension_numbers<[1], [0], [0], [1], [0, 0, 1, 1], [], []>} : vector<2x16xf32>, vector<16x256xf32>, vector<2x256xf32> -> vector<2x256xf32>
    %81 = arith.addf %76, %80 : vector<2x256xf32>
    %82 = vector.extract_strided_slice %20 {offsets = [24, 0], sizes = [2, 16], strides = [1, 1]} : vector<50x16xf32> to vector<2x16xf32>
    %c12 = arith.constant 12 : index
    %c0_57 = arith.constant 0 : index
    %c0_58 = arith.constant 0 : index
    %83 = vector.load %arg4[%c12, %c0_57, %c0_58] : memref<25x16x256xf32, #tpu.memory_space<vmem>>, vector<1x16x256xf32>
    %84 = vector.shape_cast %83 : vector<1x16x256xf32> to vector<16x256xf32>
    %cst_59 = arith.constant dense<0.000000e+00> : vector<2x256xf32>
    %85 = tpu.matmul %82, %84, %cst_59 {dimension_numbers = #tpu.dot_dimension_numbers<[1], [0], [0], [1], [0, 0, 1, 1], [], []>} : vector<2x16xf32>, vector<16x256xf32>, vector<2x256xf32> -> vector<2x256xf32>
    %86 = arith.addf %81, %85 : vector<2x256xf32>
    %87 = vector.extract_strided_slice %20 {offsets = [26, 0], sizes = [2, 16], strides = [1, 1]} : vector<50x16xf32> to vector<2x16xf32>
    %c13 = arith.constant 13 : index
    %c0_60 = arith.constant 0 : index
    %c0_61 = arith.constant 0 : index
    %88 = vector.load %arg4[%c13, %c0_60, %c0_61] : memref<25x16x256xf32, #tpu.memory_space<vmem>>, vector<1x16x256xf32>
    %89 = vector.shape_cast %88 : vector<1x16x256xf32> to vector<16x256xf32>
    %cst_62 = arith.constant dense<0.000000e+00> : vector<2x256xf32>
    %90 = tpu.matmul %87, %89, %cst_62 {dimension_numbers = #tpu.dot_dimension_numbers<[1], [0], [0], [1], [0, 0, 1, 1], [], []>} : vector<2x16xf32>, vector<16x256xf32>, vector<2x256xf32> -> vector<2x256xf32>
    %91 = arith.addf %86, %90 : vector<2x256xf32>
    %92 = vector.extract_strided_slice %20 {offsets = [28, 0], sizes = [2, 16], strides = [1, 1]} : vector<50x16xf32> to vector<2x16xf32>
    %c14 = arith.constant 14 : index
    %c0_63 = arith.constant 0 : index
    %c0_64 = arith.constant 0 : index
    %93 = vector.load %arg4[%c14, %c0_63, %c0_64] : memref<25x16x256xf32, #tpu.memory_space<vmem>>, vector<1x16x256xf32>
    %94 = vector.shape_cast %93 : vector<1x16x256xf32> to vector<16x256xf32>
    %cst_65 = arith.constant dense<0.000000e+00> : vector<2x256xf32>
    %95 = tpu.matmul %92, %94, %cst_65 {dimension_numbers = #tpu.dot_dimension_numbers<[1], [0], [0], [1], [0, 0, 1, 1], [], []>} : vector<2x16xf32>, vector<16x256xf32>, vector<2x256xf32> -> vector<2x256xf32>
    %96 = arith.addf %91, %95 : vector<2x256xf32>
    %97 = vector.extract_strided_slice %20 {offsets = [30, 0], sizes = [2, 16], strides = [1, 1]} : vector<50x16xf32> to vector<2x16xf32>
    %c15 = arith.constant 15 : index
    %c0_66 = arith.constant 0 : index
    %c0_67 = arith.constant 0 : index
    %98 = vector.load %arg4[%c15, %c0_66, %c0_67] : memref<25x16x256xf32, #tpu.memory_space<vmem>>, vector<1x16x256xf32>
    %99 = vector.shape_cast %98 : vector<1x16x256xf32> to vector<16x256xf32>
    %cst_68 = arith.constant dense<0.000000e+00> : vector<2x256xf32>
    %100 = tpu.matmul %97, %99, %cst_68 {dimension_numbers = #tpu.dot_dimension_numbers<[1], [0], [0], [1], [0, 0, 1, 1], [], []>} : vector<2x16xf32>, vector<16x256xf32>, vector<2x256xf32> -> vector<2x256xf32>
    %101 = arith.addf %96, %100 : vector<2x256xf32>
    %102 = vector.extract_strided_slice %20 {offsets = [32, 0], sizes = [2, 16], strides = [1, 1]} : vector<50x16xf32> to vector<2x16xf32>
    %c16 = arith.constant 16 : index
    %c0_69 = arith.constant 0 : index
    %c0_70 = arith.constant 0 : index
    %103 = vector.load %arg4[%c16, %c0_69, %c0_70] : memref<25x16x256xf32, #tpu.memory_space<vmem>>, vector<1x16x256xf32>
    %104 = vector.shape_cast %103 : vector<1x16x256xf32> to vector<16x256xf32>
    %cst_71 = arith.constant dense<0.000000e+00> : vector<2x256xf32>
    %105 = tpu.matmul %102, %104, %cst_71 {dimension_numbers = #tpu.dot_dimension_numbers<[1], [0], [0], [1], [0, 0, 1, 1], [], []>} : vector<2x16xf32>, vector<16x256xf32>, vector<2x256xf32> -> vector<2x256xf32>
    %106 = arith.addf %101, %105 : vector<2x256xf32>
    %107 = vector.extract_strided_slice %20 {offsets = [34, 0], sizes = [2, 16], strides = [1, 1]} : vector<50x16xf32> to vector<2x16xf32>
    %c17 = arith.constant 17 : index
    %c0_72 = arith.constant 0 : index
    %c0_73 = arith.constant 0 : index
    %108 = vector.load %arg4[%c17, %c0_72, %c0_73] : memref<25x16x256xf32, #tpu.memory_space<vmem>>, vector<1x16x256xf32>
    %109 = vector.shape_cast %108 : vector<1x16x256xf32> to vector<16x256xf32>
    %cst_74 = arith.constant dense<0.000000e+00> : vector<2x256xf32>
    %110 = tpu.matmul %107, %109, %cst_74 {dimension_numbers = #tpu.dot_dimension_numbers<[1], [0], [0], [1], [0, 0, 1, 1], [], []>} : vector<2x16xf32>, vector<16x256xf32>, vector<2x256xf32> -> vector<2x256xf32>
    %111 = arith.addf %106, %110 : vector<2x256xf32>
    %112 = vector.extract_strided_slice %20 {offsets = [36, 0], sizes = [2, 16], strides = [1, 1]} : vector<50x16xf32> to vector<2x16xf32>
    %c18 = arith.constant 18 : index
    %c0_75 = arith.constant 0 : index
    %c0_76 = arith.constant 0 : index
    %113 = vector.load %arg4[%c18, %c0_75, %c0_76] : memref<25x16x256xf32, #tpu.memory_space<vmem>>, vector<1x16x256xf32>
    %114 = vector.shape_cast %113 : vector<1x16x256xf32> to vector<16x256xf32>
    %cst_77 = arith.constant dense<0.000000e+00> : vector<2x256xf32>
    %115 = tpu.matmul %112, %114, %cst_77 {dimension_numbers = #tpu.dot_dimension_numbers<[1], [0], [0], [1], [0, 0, 1, 1], [], []>} : vector<2x16xf32>, vector<16x256xf32>, vector<2x256xf32> -> vector<2x256xf32>
    %116 = arith.addf %111, %115 : vector<2x256xf32>
    %117 = vector.extract_strided_slice %20 {offsets = [38, 0], sizes = [2, 16], strides = [1, 1]} : vector<50x16xf32> to vector<2x16xf32>
    %c19 = arith.constant 19 : index
    %c0_78 = arith.constant 0 : index
    %c0_79 = arith.constant 0 : index
    %118 = vector.load %arg4[%c19, %c0_78, %c0_79] : memref<25x16x256xf32, #tpu.memory_space<vmem>>, vector<1x16x256xf32>
    %119 = vector.shape_cast %118 : vector<1x16x256xf32> to vector<16x256xf32>
    %cst_80 = arith.constant dense<0.000000e+00> : vector<2x256xf32>
    %120 = tpu.matmul %117, %119, %cst_80 {dimension_numbers = #tpu.dot_dimension_numbers<[1], [0], [0], [1], [0, 0, 1, 1], [], []>} : vector<2x16xf32>, vector<16x256xf32>, vector<2x256xf32> -> vector<2x256xf32>
    %121 = arith.addf %116, %120 : vector<2x256xf32>
    %122 = vector.extract_strided_slice %20 {offsets = [40, 0], sizes = [2, 16], strides = [1, 1]} : vector<50x16xf32> to vector<2x16xf32>
    %c20 = arith.constant 20 : index
    %c0_81 = arith.constant 0 : index
    %c0_82 = arith.constant 0 : index
    %123 = vector.load %arg4[%c20, %c0_81, %c0_82] : memref<25x16x256xf32, #tpu.memory_space<vmem>>, vector<1x16x256xf32>
    %124 = vector.shape_cast %123 : vector<1x16x256xf32> to vector<16x256xf32>
    %cst_83 = arith.constant dense<0.000000e+00> : vector<2x256xf32>
    %125 = tpu.matmul %122, %124, %cst_83 {dimension_numbers = #tpu.dot_dimension_numbers<[1], [0], [0], [1], [0, 0, 1, 1], [], []>} : vector<2x16xf32>, vector<16x256xf32>, vector<2x256xf32> -> vector<2x256xf32>
    %126 = arith.addf %121, %125 : vector<2x256xf32>
    %127 = vector.extract_strided_slice %20 {offsets = [42, 0], sizes = [2, 16], strides = [1, 1]} : vector<50x16xf32> to vector<2x16xf32>
    %c21 = arith.constant 21 : index
    %c0_84 = arith.constant 0 : index
    %c0_85 = arith.constant 0 : index
    %128 = vector.load %arg4[%c21, %c0_84, %c0_85] : memref<25x16x256xf32, #tpu.memory_space<vmem>>, vector<1x16x256xf32>
    %129 = vector.shape_cast %128 : vector<1x16x256xf32> to vector<16x256xf32>
    %cst_86 = arith.constant dense<0.000000e+00> : vector<2x256xf32>
    %130 = tpu.matmul %127, %129, %cst_86 {dimension_numbers = #tpu.dot_dimension_numbers<[1], [0], [0], [1], [0, 0, 1, 1], [], []>} : vector<2x16xf32>, vector<16x256xf32>, vector<2x256xf32> -> vector<2x256xf32>
    %131 = arith.addf %126, %130 : vector<2x256xf32>
    %132 = vector.extract_strided_slice %20 {offsets = [44, 0], sizes = [2, 16], strides = [1, 1]} : vector<50x16xf32> to vector<2x16xf32>
    %c22 = arith.constant 22 : index
    %c0_87 = arith.constant 0 : index
    %c0_88 = arith.constant 0 : index
    %133 = vector.load %arg4[%c22, %c0_87, %c0_88] : memref<25x16x256xf32, #tpu.memory_space<vmem>>, vector<1x16x256xf32>
    %134 = vector.shape_cast %133 : vector<1x16x256xf32> to vector<16x256xf32>
    %cst_89 = arith.constant dense<0.000000e+00> : vector<2x256xf32>
    %135 = tpu.matmul %132, %134, %cst_89 {dimension_numbers = #tpu.dot_dimension_numbers<[1], [0], [0], [1], [0, 0, 1, 1], [], []>} : vector<2x16xf32>, vector<16x256xf32>, vector<2x256xf32> -> vector<2x256xf32>
    %136 = arith.addf %131, %135 : vector<2x256xf32>
    %137 = vector.extract_strided_slice %20 {offsets = [46, 0], sizes = [2, 16], strides = [1, 1]} : vector<50x16xf32> to vector<2x16xf32>
    %c23 = arith.constant 23 : index
    %c0_90 = arith.constant 0 : index
    %c0_91 = arith.constant 0 : index
    %138 = vector.load %arg4[%c23, %c0_90, %c0_91] : memref<25x16x256xf32, #tpu.memory_space<vmem>>, vector<1x16x256xf32>
    %139 = vector.shape_cast %138 : vector<1x16x256xf32> to vector<16x256xf32>
    %cst_92 = arith.constant dense<0.000000e+00> : vector<2x256xf32>
    %140 = tpu.matmul %137, %139, %cst_92 {dimension_numbers = #tpu.dot_dimension_numbers<[1], [0], [0], [1], [0, 0, 1, 1], [], []>} : vector<2x16xf32>, vector<16x256xf32>, vector<2x256xf32> -> vector<2x256xf32>
    %141 = arith.addf %136, %140 : vector<2x256xf32>
    %142 = vector.extract_strided_slice %20 {offsets = [48, 0], sizes = [2, 16], strides = [1, 1]} : vector<50x16xf32> to vector<2x16xf32>
    %c24 = arith.constant 24 : index
    %c0_93 = arith.constant 0 : index
    %c0_94 = arith.constant 0 : index
    %143 = vector.load %arg4[%c24, %c0_93, %c0_94] : memref<25x16x256xf32, #tpu.memory_space<vmem>>, vector<1x16x256xf32>
    %144 = vector.shape_cast %143 : vector<1x16x256xf32> to vector<16x256xf32>
    %cst_95 = arith.constant dense<0.000000e+00> : vector<2x256xf32>
    %145 = tpu.matmul %142, %144, %cst_95 {dimension_numbers = #tpu.dot_dimension_numbers<[1], [0], [0], [1], [0, 0, 1, 1], [], []>} : vector<2x16xf32>, vector<16x256xf32>, vector<2x256xf32> -> vector<2x256xf32>
    %146 = arith.addf %141, %145 : vector<2x256xf32>
    %c0_96 = arith.constant 0 : index
    %c0_97 = arith.constant 0 : index
    %147 = vector.load %arg5[%c0_96, %c0_97] : memref<1x256xf32, #tpu.memory_space<vmem>>, vector<1x256xf32>
    %148 = vector.broadcast %147 : vector<1x256xf32> to vector<2x256xf32>
    %149 = arith.addf %146, %148 : vector<2x256xf32>
    %cst_98 = arith.constant 0.000000e+00 : f32
    %150 = vector.broadcast %cst_98 : f32 to vector<2x256xf32>
    %151 = arith.maximumf %149, %150 : vector<2x256xf32>
    %c0_99 = arith.constant 0 : index
    %c0_100 = arith.constant 0 : index
    %152 = vector.load %arg6[%c0_99, %c0_100] : memref<256x128xf32, #tpu.memory_space<vmem>>, vector<256x128xf32>
    %cst_101 = arith.constant dense<0.000000e+00> : vector<2x128xf32>
    %153 = tpu.matmul %151, %152, %cst_101 {dimension_numbers = #tpu.dot_dimension_numbers<[1], [0], [0], [1], [0, 0, 1, 1], [], []>} : vector<2x256xf32>, vector<256x128xf32>, vector<2x128xf32> -> vector<2x128xf32>
    %c0_102 = arith.constant 0 : index
    %c0_103 = arith.constant 0 : index
    %154 = vector.load %arg7[%c0_102, %c0_103] : memref<1x128xf32, #tpu.memory_space<vmem>>, vector<1x128xf32>
    %155 = vector.broadcast %154 : vector<1x128xf32> to vector<2x128xf32>
    %156 = arith.addf %153, %155 : vector<2x128xf32>
    %cst_104 = arith.constant 0.000000e+00 : f32
    %157 = vector.broadcast %cst_104 : f32 to vector<2x128xf32>
    %158 = arith.maximumf %156, %157 : vector<2x128xf32>
    %c0_105 = arith.constant 0 : index
    %c0_106 = arith.constant 0 : index
    %159 = vector.load %arg8[%c0_105, %c0_106] : memref<128x100xf32, #tpu.memory_space<vmem>>, vector<128x100xf32>
    %cst_107 = arith.constant dense<0.000000e+00> : vector<2x100xf32>
    %160 = tpu.matmul %158, %159, %cst_107 {dimension_numbers = #tpu.dot_dimension_numbers<[1], [0], [0], [1], [0, 0, 1, 1], [], []>} : vector<2x128xf32>, vector<128x100xf32>, vector<2x100xf32> -> vector<2x100xf32>
    %c0_108 = arith.constant 0 : index
    %c0_109 = arith.constant 0 : index
    %161 = vector.load %arg9[%c0_108, %c0_109] : memref<1x100xf32, #tpu.memory_space<vmem>>, vector<1x100xf32>
    %162 = vector.broadcast %161 : vector<1x100xf32> to vector<2x100xf32>
    %163 = arith.addf %160, %162 : vector<2x100xf32>
    %c0_110 = arith.constant 0 : index
    %c0_111 = arith.constant 0 : index
    %164 = vector.load %arg10[%c0_110, %c0_111] : memref<2x100xf32, #tpu.memory_space<vmem>>, vector<2x100xf32>
    tpu.vector_store %arg10[%c0_110, %c0_111], %163 {strides = array<i32>} : memref<2x100xf32, #tpu.memory_space<vmem>>, vector<2x100xf32>,
    return
  }
  func.func @transform_0(%arg0: i32) -> (i32, i32, i32) {
    %c0_i32 = arith.constant 0 : i32
    %c0_i32_0 = arith.constant 0 : i32
    %c0_i32_1 = arith.constant 0 : i32
    %c0_i32_2 = arith.constant 0 : i32
    return %c0_i32, %c0_i32_0, %c0_i32_1 : i32, i32, i32
  }
  func.func @transform_1(%arg0: i32) -> (i32, i32) {
    %c0_i32 = arith.constant 0 : i32
    %c0_i32_0 = arith.constant 0 : i32
    %c0_i32_1 = arith.constant 0 : i32
    return %c0_i32, %c0_i32_0 : i32, i32
  }
  func.func @transform_2(%arg0: i32) -> (i32, i32) {
    %c0_i32 = arith.constant 0 : i32
    %c0_i32_0 = arith.constant 0 : i32
    %c0_i32_1 = arith.constant 0 : i32
    return %c0_i32, %c0_i32_0 : i32, i32
  }
  func.func @transform_3(%arg0: i32) -> (i32, i32, i32) {
    %c0_i32 = arith.constant 0 : i32
    %c0_i32_0 = arith.constant 0 : i32
    %c0_i32_1 = arith.constant 0 : i32
    %c0_i32_2 = arith.constant 0 : i32
    return %c0_i32, %c0_i32_0, %c0_i32_1 : i32, i32, i32
  }
  func.func @transform_4(%arg0: i32) -> (i32, i32) {
    %c0_i32 = arith.constant 0 : i32
    %c0_i32_0 = arith.constant 0 : i32
    %c0_i32_1 = arith.constant 0 : i32
    return %c0_i32, %c0_i32_0 : i32, i32
  }
  func.func @transform_5(%arg0: i32) -> (i32, i32) {
    %c0_i32 = arith.constant 0 : i32
    %c0_i32_0 = arith.constant 0 : i32
    %c0_i32_1 = arith.constant 0 : i32
    return %c0_i32, %c0_i32_0 : i32, i32
  }
  func.func @transform_6(%arg0: i32) -> (i32, i32) {
    %c0_i32 = arith.constant 0 : i32
    %c0_i32_0 = arith.constant 0 : i32
    %c0_i32_1 = arith.constant 0 : i32
    return %c0_i32, %c0_i32_0 : i32, i32
  }
  func.func @transform_7(%arg0: i32) -> (i32, i32) {
    %c0_i32 = arith.constant 0 : i32
    %c0_i32_0 = arith.constant 0 : i32
    %c0_i32_1 = arith.constant 0 : i32
    return %c0_i32, %c0_i32_0 : i32, i32
  }
  func.func @transform_8(%arg0: i32) -> (i32, i32) {
    %c0_i32 = arith.constant 0 : i32
    %c0_i32_0 = arith.constant 0 : i32
    %c0_i32_1 = arith.constant 0 : i32
    return %c0_i32, %c0_i32_0 : i32, i32
  }
  func.func @transform_9(%arg0: i32) -> (i32, i32) {
    %c0_i32 = arith.constant 0 : i32
    %c0_i32_0 = arith.constant 0 : i32
    %c0_i32_1 = arith.constant 0 : i32
    return %c0_i32, %c0_i32_0 : i32, i32
  }
}

</mosaic_0001>

<bundles_post_ra>
// kernel: lenet_forward.2
= control target key start
LH: loop header
LB: loop body
LE: loop exit
PB: predicated region body
PF: predicated region fallthrough
CT: control target
= control target key end

     0   :  { %v1158_v3 = vmov 0.0   ;;  %v1159_v8 = vmov 0   ;;  %vm59_vm0 = vcmask 1042432   ;;  %vm1160_vm1 = vmmov 1   ;;  %s1741_s0 = inlined_call_operand.vmem [shape: f32[4,75,392], index: 0, kind: input, shape index: {}]   ;;  %s1742_s1 = inlined_call_operand.vmem [shape: f32[6,75], index: 1, kind: input, shape index: {}]   ;;  %s1743_s2 = inlined_call_operand.vmem [shape: f32[6,1], index: 2, kind: input, shape index: {}]   ;;  %s1744_s3 = inlined_call_operand.vmem [shape: f32[6,392], index: 3, kind: output, shape index: {}]  }
   0x1   :  { %v16_v0 = vld [vmem:[%s1741_s0 + $0x8] sm:$0xff]  ;;  %v18_v2 = vld [vmem:[%s1741_s0 + $0x18] sm:$0xff]  ;;  %136 = vmatprep.mubr.f32.mxu0 %v1158_v3  ;;  %207 = vmatprep.mubr.f32.mxu1 %v1158_v3  ;;  %v15_v6 = vld [vmem:[%s1741_s0] sm:$0xff]  ;;  %vm55_vm3 = vcmask 613376   ;;  %vm828_vm4 = vcmask 62464  }
   0x2   :  { %v20_v1 = vld [vmem:[%s1741_s0 + $0x28] sm:$0xff]  ;;  %v22_v5 = vld [vmem:[%s1741_s0 + $0x38] sm:$0xff]  ;;  %v19_v7 = vld [vmem:[%s1741_s0 + $0x20] sm:$0xff]  ;;  %1157 = vset.pattern.permute.xlu0 %v1159_v8 }
   0x3   :  { %v978_v4 = vpack.c.bf16 %v20_v1, %v16_v0  ;;  %v1000_v9 = vpack.c.bf16 %v22_v5, %v18_v2  ;;  %v980_v10 = vpack.c.bf16 %v19_v7, %v15_v6  ;;  %v17_v11 = vld [vmem:[%s1741_s0 + $0x10] sm:$0xff]  ;;  %v24_v13 = vld [vmem:[%s1741_s0 + $0x48] sm:$0xff]  ;;  %v26_v16 = vld [vmem:[%s1741_s0 + $0x58] sm:$0xff] }
   0x4   :  { %v21_v12 = vld [vmem:[%s1741_s0 + $0x30] sm:$0xff]  ;;  %v28_v15 = vld [vmem:[%s1741_s0 + $0x68] sm:$0xff]  ;;  %v30_v17 = vld [vmem:[%s1741_s0 + $0x78] sm:$0xff] }
   0x5   :  { %979 = vmatprep.subr.bf16.mxu0 %v978_v4  ;;  %v1002_v14 = vpack.c.bf16 %v21_v12, %v17_v11  ;;  %1001 = vmatprep.subr.bf16.mxu1 %v1000_v9  ;;  %v982_v18 = vpack.c.bf16 %v28_v15, %v24_v13  ;;  %v1004_v19 = vpack.c.bf16 %v30_v17, %v26_v16  ;;  %v23_v20 = vld [vmem:[%s1741_s0 + $0x40] sm:$0xff]  ;;  %v25_v22 = vld [vmem:[%s1741_s0 + $0x50] sm:$0xff]  ;;  %v32_v25 = vld [vmem:[%s1741_s0 + $0x88] sm:$0xff] }
   0x6   :  { %981 = vmatpush1.bf16.msra.mxu0 %v980_v10  ;;  %v27_v21 = vld [vmem:[%s1741_s0 + $0x60] sm:$0xff]  ;;  %v29_v24 = vld [vmem:[%s1741_s0 + $0x70] sm:$0xff]  ;;  %v36_v26 = vld [vmem:[%s1741_s0 + $0xa8] sm:$0xff] }
   0x7   :  { %1003 = vmatpush1.bf16.msra.mxu1 %v1002_v14  ;;  %v984_v23 = vpack.c.bf16 %v27_v21, %v23_v20  ;;  %983 = vmatprep.subr.bf16.mxu0 %v982_v18  ;;  %v1006_v27 = vpack.c.bf16 %v29_v24, %v25_v22  ;;  %v986_v28 = vpack.c.bf16 %v36_v26, %v32_v25  ;;  %v34_v29 = vld [vmem:[%s1741_s0 + $0x98] sm:$0xff]  ;;  %v31_v31 = vld [vmem:[%s1741_s0 + $0x80] sm:$0xff]  ;;  %v33_v34 = vld [vmem:[%s1741_s0 + $0x90] sm:$0xff] }
   0x8   :  { %1005 = vmatprep.subr.bf16.mxu1 %v1004_v19  ;;  %v38_v30 = vld [vmem:[%s1741_s0 + $0xb8] sm:$0xff]  ;;  %v35_v33 = vld [vmem:[%s1741_s0 + $0xa0] sm:$0xff]  ;;  %v37_v35 = vld [vmem:[%s1741_s0 + $0xb0] sm:$0xff] }
   0x9   :  { %v1008_v32 = vpack.c.bf16 %v38_v30, %v34_v29  ;;  %v988_v36 = vpack.c.bf16 %v35_v33, %v31_v31  ;;  %v40_v37 = vld [vmem:[%s1741_s0 + $0xc8] sm:$0xff]  ;;  %v42_v39 = vld [vmem:[%s1741_s0 + $0xd8] sm:$0xff]  ;;  %v1010_v40 = vpack.c.bf16 %v37_v35, %v33_v34  ;;  %v39_v43 = vld [vmem:[%s1741_s0 + $0xc0] sm:$0xff] }
   0xa   :  { %985 = vmatpush1.bf16.msra.mxu0 %v984_v23  ;;  %v44_v38 = vld [vmem:[%s1741_s0 + $0xe8] sm:$0xff]  ;;  %v46_v42 = vld [vmem:[%s1741_s0 + $0xf8] sm:$0xff]  ;;  %v43_v44 = vld [vmem:[%s1741_s0 + $0xe0] sm:$0xff] }
   0xb   :  { %1007 = vmatpush1.bf16.msra.mxu1 %v1006_v27  ;;  %987 = vmatprep.subr.bf16.mxu0 %v986_v28  ;;  %v990_v41 = vpack.c.bf16 %v44_v38, %v40_v37  ;;  %v1012_v45 = vpack.c.bf16 %v46_v42, %v42_v39  ;;  %v41_v46 = vld [vmem:[%s1741_s0 + $0xd0] sm:$0xff]  ;;  %v48_v48 = vld [vmem:[%s1741_s0 + $0x108] sm:$0xff]  ;;  %v50_v50 = vld [vmem:[%s1741_s0 + $0x118] sm:$0xff]  ;;  %v992_v51 = vpack.c.bf16 %v43_v44, %v39_v43 }
   0xc   :  { %1009 = vmatprep.subr.bf16.mxu1 %v1008_v32  ;;  %v45_v47 = vld [vmem:[%s1741_s0 + $0xf0] sm:$0xff]  ;;  %v52_v49 = vld [vmem:[%s1741_s0 + $0x128] sm:$0x7]  ;;  %vm1288_vm2 = vmpackc.low %vm59_vm0, %vm1160_vm1 }
   0xd   :  { %v54_v53 = vld [vmem:[%s1741_s0 + $0x138] sm:$0x7]  ;;  %v1014_v54 = vpack.c.bf16 %v45_v47, %v41_v46  ;;  %v994_v55 = vpack.c.bf16 %v52_v49, %v48_v48  ;;  %v47_v56 = vld [vmem:[%s1741_s0 + $0x100] sm:$0xff]  ;;  %v49_v58 = vld [vmem:[%s1741_s0 + $0x110] sm:$0xff] }
   0xe   :  { %989 = vmatpush1.bf16.msra.mxu0 %v988_v36  ;;  %v51_v57 = vld [vmem:[%s1741_s0 + $0x120] sm:$0x7]  ;;  %v1016_v59 = vpack.c.bf16 %v54_v53, %v50_v50  ;;  %v53_v60 = vld [vmem:[%s1741_s0 + $0x130] sm:$0x7]  ;;  %v841_v61 = vld [vmem:[%s1741_s0 + $0x148] sm:$0xff] }
   0xf   :  { %1011 = vmatpush1.bf16.msra.mxu1 %v1010_v40  ;;  %991 = vmatprep.subr.bf16.mxu0 %v990_v41  ;;  %v845_v62 = vld [vmem:[%s1741_s0 + $0x168] sm:$0xff]  ;;  %v843_v63 = vld [vmem:[%s1741_s0 + $0x158] sm:$0xff]  ;;  %v997_v1 = vpack.c.bf16 %v51_v57, %v47_v56  ;;  %v1019_v2 = vpack.c.bf16 %v53_v60, %v49_v58  ;;  %v840_v5 = vld [vmem:[%s1741_s0 + $0x140] sm:$0xff] }
  0x10   :  { %1013 = vmatprep.subr.bf16.mxu1 %v1012_v45  ;;  %v847_v0 = vld [vmem:[%s1741_s0 + $0x178] sm:$0xff]  ;;  %v1022_v4 = vpack.c.bf16 %v845_v62, %v841_v61  ;;  %v844_v6 = vld [vmem:[%s1741_s0 + $0x160] sm:$0xff]  ;;  %v842_v7 = vld [vmem:[%s1741_s0 + $0x150] sm:$0xff] }
  0x11   :  { %v1044_v8 = vpack.c.bf16 %v847_v0, %v843_v63  ;;  %v846_v9 = vld [vmem:[%s1741_s0 + $0x170] sm:$0xff]  ;;  %v849_v10 = vld [vmem:[%s1741_s0 + $0x188] sm:$0xff]  ;;  %v851_v12 = vld [vmem:[%s1741_s0 + $0x198] sm:$0xff]  ;;  %v1024_v15 = vpack.c.bf16 %v844_v6, %v840_v5 }
  0x12   :  { %993 = vmatpush1.bf16.msra.mxu0 %v992_v51  ;;  %v853_v11 = vld [vmem:[%s1741_s0 + $0x1a8] sm:$0xff]  ;;  %v855_v13 = vld [vmem:[%s1741_s0 + $0x1b8] sm:$0xff]  ;;  %v1352_v14 = vld [vmem:[%s1742_s1] sm:$0x3f]  ;;  %v1046_v16 = vpack.c.bf16 %v846_v9, %v842_v7 }
  0x13   :  { %1015 = vmatpush1.bf16.msra.mxu1 %v1014_v54  ;;  %996 = vmatprep.subr.msk.bf16.mxu0 %vm1288_vm2, %v994_v55  ;;  %v1026_v17 = vpack.c.bf16 %v853_v11, %v849_v10  ;;  %v848_v18 = vld [vmem:[%s1741_s0 + $0x180] sm:$0xff]  ;;  %v850_v20 = vld [vmem:[%s1741_s0 + $0x190] sm:$0xff]  ;;  %v1048_v21 = vpack.c.bf16 %v855_v13, %v851_v12  ;;  %v857_v23 = vld [vmem:[%s1741_s0 + $0x1c8] sm:$0xff] }
  0x14   :  { %1018 = vmatprep.subr.msk.bf16.mxu1 %vm1288_vm2, %v1016_v59  ;;  %v852_v19 = vld [vmem:[%s1741_s0 + $0x1a0] sm:$0xff]  ;;  %v854_v22 = vld [vmem:[%s1741_s0 + $0x1b0] sm:$0xff]  ;;  %v861_v24 = vld [vmem:[%s1741_s0 + $0x1e8] sm:$0xff] }
  0x15   :  { %v859_v25 = vld [vmem:[%s1741_s0 + $0x1d8] sm:$0xff]  ;;  %v1028_v27 = vpack.c.bf16 %v852_v19, %v848_v18  ;;  %v1050_v28 = vpack.c.bf16 %v854_v22, %v850_v20  ;;  %v1030_v29 = vpack.c.bf16 %v861_v24, %v857_v23  ;;  %v856_v30 = vld [vmem:[%s1741_s0 + $0x1c0] sm:$0xff]  ;;  %v858_v32 = vld [vmem:[%s1741_s0 + $0x1d0] sm:$0xff] }
  0x16   :  { %999 = vmatpush1.bf16.msk.msra.mxu0 %vm1288_vm2, %v997_v1  ;;  %v863_v26 = vld [vmem:[%s1741_s0 + $0x1f8] sm:$0xff]  ;;  %v860_v31 = vld [vmem:[%s1741_s0 + $0x1e0] sm:$0xff]  ;;  %v862_v34 = vld [vmem:[%s1741_s0 + $0x1f0] sm:$0xff] }
  0x17   :  { %1021 = vmatpush1.bf16.msk.msra.mxu1 %vm1288_vm2, %v1019_v2  ;;  %1023 = vmatprep.subr.bf16.mxu0 %v1022_v4  ;;  %v1052_v33 = vpack.c.bf16 %v863_v26, %v859_v25  ;;  %v865_v35 = vld [vmem:[%s1741_s0 + $0x208] sm:$0xff]  ;;  %v867_v37 = vld [vmem:[%s1741_s0 + $0x218] sm:$0xff]  ;;  %v1032_v39 = vpack.c.bf16 %v860_v31, %v856_v30  ;;  %v1054_v40 = vpack.c.bf16 %v862_v34, %v858_v32  ;;  %v864_v42 = vld [vmem:[%s1741_s0 + $0x200] sm:$0xff] }
  0x18   :  { %1045 = vmatprep.subr.bf16.mxu1 %v1044_v8  ;;  %v869_v36 = vld [vmem:[%s1741_s0 + $0x228] sm:$0xff]  ;;  %v871_v38 = vld [vmem:[%s1741_s0 + $0x238] sm:$0xff]  ;;  %v868_v43 = vld [vmem:[%s1741_s0 + $0x220] sm:$0xff] }
  0x19   :  { %836 = vmatmul.mubr.msk.f32.vlgmr.msra.gmra.mrb[0].mxu0 %vm55_vm3, %v1352_v14  ;;  %v1034_v41 = vpack.c.bf16 %v869_v36, %v865_v35  ;;  %v866_v44 = vld [vmem:[%s1741_s0 + $0x210] sm:$0xff]  ;;  %v1056_v45 = vpack.c.bf16 %v871_v38, %v867_v37  ;;  %v873_v47 = vld [vmem:[%s1741_s0 + $0x248] sm:$0xff]  ;;  %v875_v49 = vld [vmem:[%s1741_s0 + $0x258] sm:$0xff]  ;;  %v1036_v51 = vpack.c.bf16 %v868_v43, %v864_v42 }
  0x1a   :  { %839 = vmatmul.mubr.msk.f32.vlgmr.msra.gmra.mrb[0].mxu1 %vm55_vm3, %v1352_v14  ;;  %1025 = vmatpush1.bf16.msra.mxu0 %v1024_v15  ;;  %v870_v46 = vld [vmem:[%s1741_s0 + $0x230] sm:$0xff]  ;;  %v877_v48 = vld [vmem:[%s1741_s0 + $0x268] sm:$0x7]  ;;  %v879_v50 = vld [vmem:[%s1741_s0 + $0x278] sm:$0x7] }
  0x1b   :  { %1047 = vmatpush1.bf16.msra.mxu1 %v1046_v16  ;;  %1027 = vmatprep.subr.bf16.mxu0 %v1026_v17  ;;  %v1058_v53 = vpack.c.bf16 %v870_v46, %v866_v44  ;;  %v1038_v54 = vpack.c.bf16 %v877_v48, %v873_v47  ;;  %v872_v55 = vld [vmem:[%s1741_s0 + $0x240] sm:$0xff]  ;;  %v874_v57 = vld [vmem:[%s1741_s0 + $0x250] sm:$0xff]  ;;  %v1060_v58 = vpack.c.bf16 %v879_v50, %v875_v49  ;;  %v887_v60 = vld [vmem:[%s1741_s0 + $0x288] sm:$0xff] }
  0x1c   :  { %1049 = vmatprep.subr.bf16.mxu1 %v1048_v21  ;;  %331 = vmatprep.mubr.f32.mxu0 %v1158_v3  ;;  %v876_v56 = vld [vmem:[%s1741_s0 + $0x260] sm:$0x7]  ;;  %v878_v59 = vld [vmem:[%s1741_s0 + $0x270] sm:$0x7]  ;;  %v891_v61 = vld [vmem:[%s1741_s0 + $0x2a8] sm:$0xff] }
  0x1d   :  { %402 = vmatprep.mubr.f32.mxu1 %v1158_v3  ;;  %v889_v62 = vld [vmem:[%s1741_s0 + $0x298] sm:$0xff]  ;;  %v1041_v0 = vpack.c.bf16 %v876_v56, %v872_v55  ;;  %v1063_v1 = vpack.c.bf16 %v878_v59, %v874_v57  ;;  %v1066_v2 = vpack.c.bf16 %v891_v61, %v887_v60  ;;  %v886_v4 = vld [vmem:[%s1741_s0 + $0x280] sm:$0xff]  ;;  %v888_v6 = vld [vmem:[%s1741_s0 + $0x290] sm:$0xff] }
  0x1e   :  { %1029 = vmatpush1.bf16.msra.mxu0 %v1028_v27  ;;  %v893_v63 = vld [vmem:[%s1741_s0 + $0x2b8] sm:$0xff]  ;;  %v890_v5 = vld [vmem:[%s1741_s0 + $0x2a0] sm:$0xff]  ;;  %v892_v8 = vld [vmem:[%s1741_s0 + $0x2b0] sm:$0xff] }
  0x1f   :  { %1051 = vmatpush1.bf16.msra.mxu1 %v1050_v28  ;;  %1031 = vmatprep.subr.bf16.mxu0 %v1030_v29  ;;  %v1088_v7 = vpack.c.bf16 %v893_v63, %v889_v62  ;;  %v895_v9 = vld [vmem:[%s1741_s0 + $0x2c8] sm:$0xff]  ;;  %v897_v11 = vld [vmem:[%s1741_s0 + $0x2d8] sm:$0xff]  ;;  %v1068_v13 = vpack.c.bf16 %v890_v5, %v886_v4  ;;  %v1090_v15 = vpack.c.bf16 %v892_v8, %v888_v6  ;;  %v894_v17 = vld [vmem:[%s1741_s0 + $0x2c0] sm:$0xff] }
  0x20   :  { %1053 = vmatprep.subr.bf16.mxu1 %v1052_v33  ;;  %v899_v10 = vld [vmem:[%s1741_s0 + $0x2e8] sm:$0xff]  ;;  %v901_v12 = vld [vmem:[%s1741_s0 + $0x2f8] sm:$0xff]  ;;  %v898_v18 = vld [vmem:[%s1741_s0 + $0x2e0] sm:$0xff] }
  0x21   :  { %v1070_v16 = vpack.c.bf16 %v899_v10, %v895_v9  ;;  %v896_v19 = vld [vmem:[%s1741_s0 + $0x2d0] sm:$0xff]  ;;  %v1092_v20 = vpack.c.bf16 %v901_v12, %v897_v11  ;;  %v903_v22 = vld [vmem:[%s1741_s0 + $0x308] sm:$0xff]  ;;  %v905_v24 = vld [vmem:[%s1741_s0 + $0x318] sm:$0xff]  ;;  %v1072_v26 = vpack.c.bf16 %v898_v18, %v894_v17 }
  0x22   :  { %1033 = vmatpush1.bf16.msra.mxu0 %v1032_v39  ;;  %v900_v21 = vld [vmem:[%s1741_s0 + $0x2f0] sm:$0xff]  ;;  %v907_v23 = vld [vmem:[%s1741_s0 + $0x328] sm:$0xff]  ;;  %v909_v25 = vld [vmem:[%s1741_s0 + $0x338] sm:$0xff] }
  0x23   :  { %1055 = vmatpush1.bf16.msra.mxu1 %v1054_v40  ;;  %1035 = vmatprep.subr.bf16.mxu0 %v1034_v41  ;;  %v1094_v27 = vpack.c.bf16 %v900_v21, %v896_v19  ;;  %v1074_v28 = vpack.c.bf16 %v907_v23, %v903_v22  ;;  %v902_v29 = vld [vmem:[%s1741_s0 + $0x300] sm:$0xff]  ;;  %v904_v31 = vld [vmem:[%s1741_s0 + $0x310] sm:$0xff]  ;;  %v1096_v32 = vpack.c.bf16 %v909_v25, %v905_v24  ;;  %v911_v34 = vld [vmem:[%s1741_s0 + $0x348] sm:$0xff] }
  0x24   :  { %1057 = vmatprep.subr.bf16.mxu1 %v1056_v45  ;;  %v906_v30 = vld [vmem:[%s1741_s0 + $0x320] sm:$0xff]  ;;  %v908_v33 = vld [vmem:[%s1741_s0 + $0x330] sm:$0xff]  ;;  %v915_v35 = vld [vmem:[%s1741_s0 + $0x368] sm:$0xff] }
  0x25   :  { %v913_v36 = vld [vmem:[%s1741_s0 + $0x358] sm:$0xff]  ;;  %v1076_v38 = vpack.c.bf16 %v906_v30, %v902_v29  ;;  %v1098_v39 = vpack.c.bf16 %v908_v33, %v904_v31  ;;  %v1078_v40 = vpack.c.bf16 %v915_v35, %v911_v34  ;;  %v910_v41 = vld [vmem:[%s1741_s0 + $0x340] sm:$0xff]  ;;  %v912_v43 = vld [vmem:[%s1741_s0 + $0x350] sm:$0xff] }
  0x26   :  { %1037 = vmatpush1.bf16.msra.mxu0 %v1036_v51  ;;  %v917_v37 = vld [vmem:[%s1741_s0 + $0x378] sm:$0xff]  ;;  %v914_v42 = vld [vmem:[%s1741_s0 + $0x360] sm:$0xff]  ;;  %v916_v45 = vld [vmem:[%s1741_s0 + $0x370] sm:$0xff] }
  0x27   :  { %1059 = vmatpush1.bf16.msra.mxu1 %v1058_v53  ;;  %1040 = vmatprep.subr.msk.bf16.mxu0 %vm1288_vm2, %v1038_v54  ;;  %v1100_v44 = vpack.c.bf16 %v917_v37, %v913_v36  ;;  %v919_v46 = vld [vmem:[%s1741_s0 + $0x388] sm:$0xff]  ;;  %v921_v48 = vld [vmem:[%s1741_s0 + $0x398] sm:$0xff]  ;;  %v1080_v50 = vpack.c.bf16 %v914_v42, %v910_v41  ;;  %v918_v51 = vld [vmem:[%s1741_s0 + $0x380] sm:$0xff]  ;;  %v1102_v53 = vpack.c.bf16 %v916_v45, %v912_v43 }
  0x28   :  { %1062 = vmatprep.subr.msk.bf16.mxu1 %vm1288_vm2, %v1060_v58  ;;  %v923_v47 = vld [vmem:[%s1741_s0 + $0x3a8] sm:$0x7]  ;;  %v925_v49 = vld [vmem:[%s1741_s0 + $0x3b8] sm:$0x7]  ;;  %v922_v55 = vld [vmem:[%s1741_s0 + $0x3a0] sm:$0x7] }
  0x29   :  { %v1082_v54 = vpack.c.bf16 %v923_v47, %v919_v46  ;;  %v920_v56 = vld [vmem:[%s1741_s0 + $0x390] sm:$0xff]  ;;  %v1104_v58 = vpack.c.bf16 %v925_v49, %v921_v48  ;;  %v933_v59 = vld [vmem:[%s1741_s0 + $0x3c8] sm:$0xff]  ;;  %v811_v61 = vld [vmem:[%s1743_s2] sm:$0x3f] }
  0x2a   :  { %1043 = vmatpush1.bf16.msk.msra.mxu0 %vm1288_vm2, %v1041_v0  ;;  %v924_v57 = vld [vmem:[%s1741_s0 + $0x3b0] sm:$0x7]  ;;  %v937_v60 = vld [vmem:[%s1741_s0 + $0x3e8] sm:$0xff]  ;;  %v935_v62 = vld [vmem:[%s1741_s0 + $0x3d8] sm:$0xff]  ;;  %814 = vperm.xlu0 %1157, %v811_v61   ;;  %v1085_v0 = vpack.c.bf16 %v922_v55, %v918_v51 }
  0x2b   :  { %1065 = vmatpush1.bf16.msk.msra.mxu1 %vm1288_vm2, %v1063_v1  ;;  %1067 = vmatprep.subr.bf16.mxu0 %v1066_v2  ;;  %v939_v63 = vld [vmem:[%s1741_s0 + $0x3f8] sm:$0xff]  ;;  %v1107_v1 = vpack.c.bf16 %v924_v57, %v920_v56  ;;  %v1110_v2 = vpack.c.bf16 %v937_v60, %v933_v59  ;;  %v932_v4 = vld [vmem:[%s1741_s0 + $0x3c0] sm:$0xff]  ;;  %v934_v6 = vld [vmem:[%s1741_s0 + $0x3d0] sm:$0xff] }
  0x2c   :  { %1089 = vmatprep.subr.bf16.mxu1 %v1088_v7  ;;  %v936_v5 = vld [vmem:[%s1741_s0 + $0x3e0] sm:$0xff]  ;;  %v1132_v7 = vpack.c.bf16 %v939_v63, %v935_v62  ;;  %v938_v8 = vld [vmem:[%s1741_s0 + $0x3f0] sm:$0xff]  ;;  %v941_v9 = vld [vmem:[%s1741_s0 + $0x408] sm:$0xff] }
  0x2d   :  { %882 = vmatmul.mubr.msk.f32.vlgmr.msra.gmra.mrb[2].mxu0 %vm55_vm3, %v1352_v14  ;;  %v945_v10 = vld [vmem:[%s1741_s0 + $0x428] sm:$0xff]  ;;  %v943_v11 = vld [vmem:[%s1741_s0 + $0x418] sm:$0xff]  ;;  %v940_v17 = vld [vmem:[%s1741_s0 + $0x400] sm:$0xff] }
  0x2e   :  { %885 = vmatmul.mubr.msk.f32.vlgmr.msra.gmra.mrb[2].mxu1 %vm55_vm3, %v1352_v14  ;;  %1069 = vmatpush1.bf16.msra.mxu0 %v1068_v13  ;;  %v947_v12 = vld [vmem:[%s1741_s0 + $0x438] sm:$0xff]  ;;  %v1112_v13 = vpack.c.bf16 %v936_v5, %v932_v4  ;;  %v944_v18 = vld [vmem:[%s1741_s0 + $0x420] sm:$0xff]  ;;  %v942_v19 = vld [vmem:[%s1741_s0 + $0x410] sm:$0xff] }
  0x2f   :  { %1091 = vmatpush1.bf16.msra.mxu1 %v1090_v15  ;;  %1071 = vmatprep.subr.bf16.mxu0 %v1070_v16  ;;  %v1134_v15 = vpack.c.bf16 %v938_v8, %v934_v6  ;;  %v1114_v16 = vpack.c.bf16 %v945_v10, %v941_v9  ;;  %v946_v21 = vld [vmem:[%s1741_s0 + $0x430] sm:$0xff]  ;;  %v949_v22 = vld [vmem:[%s1741_s0 + $0x448] sm:$0xff]  ;;  %v951_v24 = vld [vmem:[%s1741_s0 + $0x458] sm:$0xff] }
  0x30   :  { %1093 = vmatprep.subr.bf16.mxu1 %v1092_v20  ;;  %530 = vmatprep.mubr.f32.mxu0 %v1158_v3  ;;  %v1136_v20 = vpack.c.bf16 %v947_v12, %v943_v11  ;;  %v953_v23 = vld [vmem:[%s1741_s0 + $0x468] sm:$0xff]  ;;  %v955_v25 = vld [vmem:[%s1741_s0 + $0x478] sm:$0xff]  ;;  %v948_v29 = vld [vmem:[%s1741_s0 + $0x440] sm:$0xff] }
  0x31   :  { %601 = vmatprep.mubr.f32.mxu1 %v1158_v3  ;;  %v952_v30 = vld [vmem:[%s1741_s0 + $0x460] sm:$0xff]  ;;  %v950_v31 = vld [vmem:[%s1741_s0 + $0x450] sm:$0xff]  ;;  %v957_v34 = vld [vmem:[%s1741_s0 + $0x488] sm:$0xff] }
  0x32   :  { %1073 = vmatpush1.bf16.msra.mxu0 %v1072_v26  ;;  %v1116_v26 = vpack.c.bf16 %v944_v18, %v940_v17  ;;  %v954_v33 = vld [vmem:[%s1741_s0 + $0x470] sm:$0xff]  ;;  %v961_v35 = vld [vmem:[%s1741_s0 + $0x4a8] sm:$0xff]  ;;  %v959_v36 = vld [vmem:[%s1741_s0 + $0x498] sm:$0xff] }
  0x33   :  { %1095 = vmatpush1.bf16.msra.mxu1 %v1094_v27  ;;  %1075 = vmatprep.subr.bf16.mxu0 %v1074_v28  ;;  %v1138_v27 = vpack.c.bf16 %v946_v21, %v942_v19  ;;  %v1118_v28 = vpack.c.bf16 %v953_v23, %v949_v22  ;;  %v963_v37 = vld [vmem:[%s1741_s0 + $0x4b8] sm:$0xff]  ;;  %v956_v41 = vld [vmem:[%s1741_s0 + $0x480] sm:$0xff]  ;;  %v958_v43 = vld [vmem:[%s1741_s0 + $0x490] sm:$0xff] }
  0x34   :  { %1097 = vmatprep.subr.bf16.mxu1 %v1096_v32  ;;  %v1140_v32 = vpack.c.bf16 %v955_v25, %v951_v24  ;;  %v960_v42 = vld [vmem:[%s1741_s0 + $0x4a0] sm:$0xff]  ;;  %v965_v45 = vld [vmem:[%s1741_s0 + $0x4c8] sm:$0xff]  ;;  %v967_v47 = vld [vmem:[%s1741_s0 + $0x4d8] sm:$0xff] }
  0x35   :  { %v969_v46 = vld [vmem:[%s1741_s0 + $0x4e8] sm:$0x7]  ;;  %v971_v48 = vld [vmem:[%s1741_s0 + $0x4f8] sm:$0x7]  ;;  %v1124_v49 = vpack.c.bf16 %v960_v42, %v956_v41  ;;  %v966_v56 = vld [vmem:[%s1741_s0 + $0x4d0] sm:$0xff] }
  0x36   :  { %1077 = vmatpush1.bf16.msra.mxu0 %v1076_v38  ;;  %v1120_v38 = vpack.c.bf16 %v952_v30, %v948_v29  ;;  %v1126_v51 = vpack.c.bf16 %v969_v46, %v965_v45  ;;  %v1148_v55 = vpack.c.bf16 %v971_v48, %v967_v47  ;;  %v970_v57 = vld [vmem:[%s1741_s0 + $0x4f0] sm:$0x7] }
  0x37   :  { %1099 = vmatpush1.bf16.msra.mxu1 %v1098_v39  ;;  %1079 = vmatprep.subr.bf16.mxu0 %v1078_v40  ;;  %v1142_v39 = vpack.c.bf16 %v954_v33, %v950_v31  ;;  %v1122_v40 = vpack.c.bf16 %v961_v35, %v957_v34  ;;  %v1151_v59 = vpack.c.bf16 %v970_v57, %v966_v56 }
  0x38   :  { %1101 = vmatprep.subr.bf16.mxu1 %v1100_v44  ;;  %v962_v44 = vld [vmem:[%s1741_s0 + $0x4b0] sm:$0xff] }
  0x3a   :  { %1081 = vmatpush1.bf16.msra.mxu0 %v1080_v50  ;;  %v1146_v50 = vpack.c.bf16 %v962_v44, %v958_v43 }
  0x3b   :  { %1103 = vmatpush1.bf16.msra.mxu1 %v1102_v53  ;;  %1084 = vmatprep.subr.msk.bf16.mxu0 %vm1288_vm2, %v1082_v54  ;;  %v964_v53 = vld [vmem:[%s1741_s0 + $0x4c0] sm:$0xff] }
  0x3c   :  { %1106 = vmatprep.subr.msk.bf16.mxu1 %vm1288_vm2, %v1104_v58  ;;  %v968_v54 = vld [vmem:[%s1741_s0 + $0x4e0] sm:$0x7] }
  0x3d   :  { %v1129_v58 = vpack.c.bf16 %v968_v54, %v964_v53 }
  0x3e   :  { %1087 = vmatpush1.bf16.msk.msra.mxu0 %vm1288_vm2, %v1085_v0 }
  0x3f   :  { %1109 = vmatpush1.bf16.msk.msra.mxu1 %vm1288_vm2, %v1107_v1  ;;  %1111 = vmatprep.subr.bf16.mxu0 %v1110_v2 }
  0x40   :  { %1133 = vmatprep.subr.bf16.mxu1 %v1132_v7 }
  0x41   :  { %928 = vmatmul.mubr.msk.f32.vlgmr.msra.gmra.mrb[4].mxu0 %vm55_vm3, %v1352_v14 }
  0x42   :  { %931 = vmatmul.mubr.msk.f32.vlgmr.msra.gmra.mrb[4].mxu1 %vm55_vm3, %v1352_v14  ;;  %1113 = vmatpush1.bf16.msra.mxu0 %v1112_v13 }
  0x43   :  { %1135 = vmatpush1.bf16.msra.mxu1 %v1134_v15  ;;  %1115 = vmatprep.subr.bf16.mxu0 %v1114_v16 }
  0x44   :  { %1137 = vmatprep.subr.bf16.mxu1 %v1136_v20  ;;  %729 = vmatprep.mubr.f32.mxu0 %v1158_v3 }
  0x45   :  { %800 = vmatprep.mubr.f32.mxu1 %v1158_v3  ;;  %v1144_v3 = vpack.c.bf16 %v963_v37, %v959_v36 }
  0x46   :  { %1117 = vmatpush1.bf16.msra.mxu0 %v1116_v26 }
  0x47   :  { %1139 = vmatpush1.bf16.msra.mxu1 %v1138_v27  ;;  %1119 = vmatprep.subr.bf16.mxu0 %v1118_v28 }
  0x48   :  { %1141 = vmatprep.subr.bf16.mxu1 %v1140_v32 }
  0x4a   :  { %1121 = vmatpush1.bf16.msra.mxu0 %v1120_v38 }
  0x4b   :  { %1143 = vmatpush1.bf16.msra.mxu1 %v1142_v39  ;;  %1123 = vmatprep.subr.bf16.mxu0 %v1122_v40 }
  0x4c   :  { %1145 = vmatprep.subr.bf16.mxu1 %v1144_v3 }
  0x4e   :  { %1125 = vmatpush1.bf16.msra.mxu0 %v1124_v49 }
  0x4f   :  { %1147 = vmatpush1.bf16.msra.mxu1 %v1146_v50  ;;  %1128 = vmatprep.subr.msk.bf16.mxu0 %vm1288_vm2, %v1126_v51 }
  0x50   :  { %1150 = vmatprep.subr.msk.bf16.mxu1 %vm1288_vm2, %v1148_v55 }
  0x52   :  { %1131 = vmatpush1.bf16.msk.msra.mxu0 %vm1288_vm2, %v1129_v58 }
  0x53   :  { %1153 = vmatpush1.bf16.msk.msra.mxu1 %vm1288_vm2, %v1151_v59 }
  0x55   :  { %974 = vmatmul.mubr.msk.f32.vlgmr.msra.gmra.mrb[6].mxu0 %vm55_vm3, %v1352_v14 }
  0x56   :  { %977 = vmatmul.mubr.msk.f32.vlgmr.msra.gmra.mrb[6].mxu1 %vm55_vm3, %v1352_v14 }
  0xa9   :  { %v815_v17 = vpop.permute.xlu0 %814 }
  0xec   :  { %v138_v60 = vpop.f32.mrb[0].mxu0 }
  0xed   :  { %v209_v61 = vpop.f32.mrb[0].mxu1  ;;  %v140_v62 = vpop.f32.mrb[1].mxu0 }
  0xee   :  { %v211_v63 = vpop.f32.mrb[1].mxu1 }
 0x100   :  { %v333_v0 = vpop.f32.mrb[2].mxu0 }
 0x101   :  { %v409_v1 = vmax.f32 %v138_v60, %v333_v0  ;;  %v404_v2 = vpop.f32.mrb[2].mxu1  ;;  %v335_v4 = vpop.f32.mrb[3].mxu0 }
 0x102   :  { %v411_v5 = vmax.f32 %v209_v61, %v404_v2  ;;  %v410_v6 = vmax.f32 %v140_v62, %v335_v4  ;;  %v406_v7 = vpop.f32.mrb[3].mxu1 }
 0x103   :  { %v412_v8 = vmax.f32 %v211_v63, %v406_v7 }
 0x114   :  { %v532_v52 = vpop.f32.mrb[4].mxu0 }
 0x115   :  { %v608_v9 = vmax.f32 %v409_v1, %v532_v52  ;;  %v603_v10 = vpop.f32.mrb[4].mxu1  ;;  %v534_v11 = vpop.f32.mrb[5].mxu0 }
 0x116   :  { %v610_v12 = vmax.f32 %v411_v5, %v603_v10  ;;  %v609_v13 = vmax.f32 %v410_v6, %v534_v11  ;;  %v605_v15 = vpop.f32.mrb[5].mxu1 }
 0x117   :  { %v611_v14 = vmax.f32 %v412_v8, %v605_v15 }
 0x128   :  { %v731_v16 = vpop.f32.mrb[6].mxu0 }
 0x129   :  { %v807_v18 = vmax.f32 %v608_v9, %v731_v16  ;;  %v802_v19 = vpop.f32.mrb[6].mxu1  ;;  %v733_v20 = vpop.f32.mrb[7].mxu0 }
 0x12a   :  { %v809_v21 = vmax.f32 %v610_v12, %v802_v19  ;;  %v808_v22 = vmax.f32 %v609_v13, %v733_v20  ;;  %v804_v23 = vpop.f32.mrb[7].mxu1 }
 0x12b   :  { %v810_v24 = vmax.f32 %v611_v14, %v804_v23  ;;  %v817_v25 = vadd.f32 %v815_v17, %v807_v18 }
 0x12c   :  { %v818_v26 = vadd.f32 %v815_v17, %v808_v22  ;;  %v819_v27 = vadd.f32 %v815_v17, %v809_v21 }
 0x12d   :  { %v820_v28 = vadd.f32 %v815_v17, %v810_v24  ;;  %v821_v29 = vmax.f32 %v817_v25, 0.0 }
 0x12e   :  { %v822_v30 = vmax.f32 %v818_v26, 0.0  ;;  %v823_v31 = vmax.f32 %v819_v27, 0.0 }
 0x12f   :  { %v824_v32 = vmax.f32 %v820_v28, 0.0  ;;  %825 = vst [vmem:[%s1744_s3] sm:$0x3f] %v821_v29 }
 0x130   :  { %826 = vst [vmem:[%s1744_s3 + $0x8] sm:$0x3f] %v822_v30  ;;  %827 = vst [vmem:[%s1744_s3 + $0x10] sm:$0x3f] %v823_v31 }
 0x131   :  { %829 = vst.msk [vmem:[%s1744_s3 + $0x18] sm:$0x3f] %vm828_vm4, %v824_v32 }

// kernel: lenet_forward.3
= control target key start
LH: loop header
LB: loop body
LE: loop exit
PB: predicated region body
PF: predicated region fallthrough
CT: control target
= control target key end

     0   :  { %v3523_v3 = vmov 0.0|0.0   ;;  %vm66_vm0 = vcmask 179200   ;;  %s4497_s0 = inlined_call_operand.vmem [shape: f32[4,50,150], index: 0, kind: input, shape index: {}]   ;;  %s4498_s1 = inlined_call_operand.vmem [shape: f32[150,16], index: 1, kind: input, shape index: {}]   ;;  %s4499_s2 = inlined_call_operand.vmem [shape: f32[1,16], index: 2, kind: input, shape index: {}]   ;;  %s4500_s3 = inlined_call_operand.vmem [shape: f32[25,16,256], index: 3, kind: input, shape index: {}]   ;;  %s4501_s4 = inlined_call_operand.vmem [shape: f32[1,256], index: 4, kind: input, shape index: {}]   ;;  %s4502_s5 = inlined_call_operand.vmem [shape: f32[256,128], index: 5, kind: input, shape index: {}]   ;;  %s4503_s6 = inlined_call_operand.vmem [shape: f32[1,128], index: 6, kind: input, shape index: {}]   ;;  %s4504_s7 = inlined_call_operand.vmem [shape: f32[128,100], index: 7, kind: input, shape index: {}]   ;;  %s4505_s8 = inlined_call_operand.vmem [shape: f32[1,100], index: 8, kind: input, shape index: {}]   ;;  %s4506_s9 = inlined_call_operand.hbm [shape: f32[2,100], index: 9, kind: output, shape index: {}]  }
   0x1   :  { %v33_v0 = vld [vmem:[%s4498_s1] sm:$0xff]  ;;  %v34_v1 = vld [vmem:[%s4498_s1 + $0x8] sm:$0xff]  ;;  %v35_v2 = vld [vmem:[%s4498_s1 + $0x10] sm:$0xff]  ;;  %3183 = vmatprep.subr.bf16.mxu1 %v3523_v3  ;;  %3237 = vmatprep.subr.bf16.mxu0 %v3523_v3 }
   0x2   :  { %v3587_v4 = vpack.c.bf16 %v34_v1, %v33_v0  ;;  %v36_v5 = vld [vmem:[%s4498_s1 + $0x18] sm:$0xff]  ;;  %v37_v7 = vld [vmem:[%s4498_s1 + $0x20] sm:$0xff]  ;;  %v38_v8 = vld [vmem:[%s4498_s1 + $0x28] sm:$0xff] }
   0x3   :  { %v3594_v6 = vpack.c.bf16 %v36_v5, %v35_v2  ;;  %v53_v9 = vld [vmem:[%s4497_s0 + $0x8] sm:$0xff]  ;;  %v3609_v10 = vpack.c.bf16 %v38_v8, %v37_v7  ;;  %v39_v11 = vld [vmem:[%s4498_s1 + $0x30] sm:$0xff]  ;;  %v40_v12 = vld [vmem:[%s4498_s1 + $0x38] sm:$0xff] }
   0x4   :  { %3185 = vmatpush1.bf16.msra.mxu1 %v3587_v4  ;;  %3239 = vmatpush1.bf16.msra.mxu0 %v3587_v4  ;;  %v3622_v13 = vpack.c.bf16 %v40_v12, %v39_v11  ;;  %v2929_v14 = vld [vmem:[%s4497_s0 + $0xe8] sm:$0xff]  ;;  %v41_v15 = vld [vmem:[%s4498_s1 + $0x40] sm:$0xff]  ;;  %v43_v18 = vld [vmem:[%s4498_s1 + $0x50] sm:$0xff] }
   0x5   :  { %3186 = vmatprep.subr.bf16.mxu1 %v3523_v3  ;;  %3240 = vmatprep.subr.bf16.mxu0 %v3523_v3  ;;  %v42_v16 = vld [vmem:[%s4498_s1 + $0x48] sm:$0xff]  ;;  %v44_v19 = vld [vmem:[%s4498_s1 + $0x58] sm:$0xff]  ;;  %v45_v21 = vld [vmem:[%s4498_s1 + $0x60] sm:$0xff] }
   0x6   :  { %2899 = vmatprep.mubr.msk.f32.mxu1 %vm66_vm0, %v53_v9  ;;  %2943 = vmatprep.mubr.msk.f32.mxu0 %vm66_vm0, %v2929_v14  ;;  %v3638_v17 = vpack.c.bf16 %v42_v16, %v41_v15  ;;  %v3650_v20 = vpack.c.bf16 %v44_v19, %v43_v18  ;;  %v46_v22 = vld [vmem:[%s4498_s1 + $0x68] sm:$0xff]  ;;  %v47_v24 = vld [vmem:[%s4498_s1 + $0x70] sm:$0xff]  ;;  %v48_v25 = vld [vmem:[%s4498_s1 + $0x78] sm:$0xff] }
   0x7   :  { %v3662_v23 = vpack.c.bf16 %v46_v22, %v45_v21 }
   0x8   :  { %3188 = vmatpush1.bf16.msra.mxu1 %v3594_v6  ;;  %3242 = vmatpush1.bf16.msra.mxu0 %v3594_v6 }
   0x9   :  { %3189 = vmatprep.subr.bf16.mxu1 %v3523_v3  ;;  %3243 = vmatprep.subr.bf16.mxu0 %v3523_v3 }
   0xc   :  { %3191 = vmatpush1.bf16.msra.mxu1 %v3609_v10  ;;  %3245 = vmatpush1.bf16.msra.mxu0 %v3609_v10 }
   0xd   :  { %3192 = vmatprep.subr.bf16.mxu1 %v3523_v3  ;;  %3246 = vmatprep.subr.bf16.mxu0 %v3523_v3 }
  0x10   :  { %3194 = vmatpush1.bf16.msra.mxu1 %v3622_v13  ;;  %3248 = vmatpush1.bf16.msra.mxu0 %v3622_v13 }
  0x11   :  { %3195 = vmatprep.subr.bf16.mxu1 %v3523_v3  ;;  %3249 = vmatprep.subr.bf16.mxu0 %v3523_v3 }
  0x14   :  { %3197 = vmatpush1.bf16.msra.mxu1 %v3638_v17  ;;  %3251 = vmatpush1.bf16.msra.mxu0 %v3638_v17 }
  0x15   :  { %3198 = vmatprep.subr.bf16.mxu1 %v3523_v3  ;;  %3252 = vmatprep.subr.bf16.mxu0 %v3523_v3 }
  0x18   :  { %3200 = vmatpush1.bf16.msra.mxu1 %v3650_v20  ;;  %3254 = vmatpush1.bf16.msra.mxu0 %v3650_v20 }
  0x19   :  { %3201 = vmatprep.subr.bf16.mxu1 %v3523_v3  ;;  %3255 = vmatprep.subr.bf16.mxu0 %v3523_v3 }
  0x1a   :  { %14 = vsyncpa [#allocation3], 0  ;;  %v3674_v26 = vpack.c.bf16 %v48_v25, %v47_v24  ;;  %v49_v27 = vld [vmem:[%s4498_s1 + $0x80] sm:$0xff]  ;;  %v50_v28 = vld [vmem:[%s4498_s1 + $0x88] sm:$0xff]  ;;  %v3524_v30 = vmov 0.0   ;;  %vm88_vm1 = vcmask 1045504  }
  0x1b   :  { %v3686_v29 = vpack.c.bf16 %v50_v28, %v49_v27  ;;  %v3696_v31 = vld [vmem:[%s4498_s1 + $0x90] sm:$0x3f]  ;;  %v52_v32 = vld [vmem:[%s4497_s0] sm:$0xff]  ;;  %v55_v33 = vld [vmem:[%s4497_s0 + $0x18] sm:$0xff]  ;;  %vm653_vm2 = vcmask 130048   ;;  %vm3525_vm3 = vmmov 0  }
  0x1c   :  { %3203 = vmatpush1.bf16.msra.mxu1 %v3662_v23  ;;  %3257 = vmatpush1.bf16.msra.mxu0 %v3662_v23  ;;  %v2928_v34 = vld [vmem:[%s4497_s0 + $0xe0] sm:$0xff]  ;;  %v54_v35 = vld [vmem:[%s4497_s0 + $0x10] sm:$0xff]  ;;  %v2931_v36 = vld [vmem:[%s4497_s0 + $0xf8] sm:$0xff]  ;;  %vm2882_vm4 = vcmask 812032  }
  0x1d   :  { %3204 = vmatprep.subr.bf16.mxu1 %v3523_v3  ;;  %3258 = vmatprep.subr.bf16.mxu0 %v3523_v3  ;;  %v57_v37 = vld [vmem:[%s4497_s0 + $0x28] sm:$0xff]  ;;  %v2930_v38 = vld [vmem:[%s4497_s0 + $0xf0] sm:$0xff]  ;;  %v56_v39 = vld [vmem:[%s4497_s0 + $0x20] sm:$0xff] }
  0x1e   :  { %v2933_v40 = vld [vmem:[%s4497_s0 + $0x108] sm:$0xff]  ;;  %v59_v41 = vld [vmem:[%s4497_s0 + $0x38] sm:$0xff]  ;;  %v2932_v42 = vld [vmem:[%s4497_s0 + $0x100] sm:$0xff] }
  0x1f   :  { %v58_v43 = vld [vmem:[%s4497_s0 + $0x30] sm:$0xff]  ;;  %v2935_v44 = vld [vmem:[%s4497_s0 + $0x118] sm:$0xff]  ;;  %v61_v45 = vld [vmem:[%s4497_s0 + $0x48] sm:$0xff] }
  0x20   :  { %3206 = vmatpush1.bf16.msra.mxu1 %v3674_v26  ;;  %3260 = vmatpush1.bf16.msra.mxu0 %v3674_v26  ;;  %v2934_v46 = vld [vmem:[%s4497_s0 + $0x110] sm:$0xff]  ;;  %v60_v47 = vld [vmem:[%s4497_s0 + $0x40] sm:$0xff]  ;;  %v2937_v48 = vld [vmem:[%s4497_s0 + $0x128] sm:$0xff] }
  0x21   :  { %3207 = vmatprep.subr.bf16.mxu1 %v3523_v3  ;;  %3261 = vmatprep.subr.bf16.mxu0 %v3523_v3  ;;  %v63_v49 = vld [vmem:[%s4497_s0 + $0x58] sm:$0xff]  ;;  %v2936_v50 = vld [vmem:[%s4497_s0 + $0x120] sm:$0xff]  ;;  %v62_v51 = vld [vmem:[%s4497_s0 + $0x50] sm:$0xff] }
  0x22   :  { %v2939_v52 = vld [vmem:[%s4497_s0 + $0x138] sm:$0xff]  ;;  %v65_v53 = vld [vmem:[%s4497_s0 + $0x68] sm:$0x3]  ;;  %v2938_v54 = vld [vmem:[%s4497_s0 + $0x130] sm:$0xff] }
  0x23   :  { %v64_v55 = vld [vmem:[%s4497_s0 + $0x60] sm:$0x3]  ;;  %v2941_v56 = vld [vmem:[%s4497_s0 + $0x148] sm:$0x3]  ;;  %v2907_v57 = vld [vmem:[%s4497_s0 + $0x78] sm:$0xff] }
  0x24   :  { %3209 = vmatpush1.bf16.msra.mxu1 %v3686_v29  ;;  %3263 = vmatpush1.bf16.msra.mxu0 %v3686_v29  ;;  %v2940_v58 = vld [vmem:[%s4497_s0 + $0x140] sm:$0x3]  ;;  %v2906_v59 = vld [vmem:[%s4497_s0 + $0x70] sm:$0xff]  ;;  %v2909_v60 = vld [vmem:[%s4497_s0 + $0x88] sm:$0xff] }
  0x25   :  { %128 = vmatprep.subr.mxu1 %v3524_v30  ;;  %407 = vmatprep.subr.mxu0 %v3524_v30  ;;  %v2908_v61 = vld [vmem:[%s4497_s0 + $0x80] sm:$0xff]  ;;  %v2911_v62 = vld [vmem:[%s4497_s0 + $0x98] sm:$0xff]  ;;  %v2910_v63 = vld [vmem:[%s4497_s0 + $0x90] sm:$0xff] }
  0x26   :  { %v2913_v0 = vld [vmem:[%s4497_s0 + $0xa8] sm:$0xff]  ;;  %v2912_v1 = vld [vmem:[%s4497_s0 + $0xa0] sm:$0xff]  ;;  %v2915_v2 = vld [vmem:[%s4497_s0 + $0xb8] sm:$0xff] }
  0x27   :  { %v2917_v5 = vld [vmem:[%s4497_s0 + $0xc8] sm:$0xff]  ;;  %v2919_v7 = vld [vmem:[%s4497_s0 + $0xd8] sm:$0x3]  ;;  %v2918_v8 = vld [vmem:[%s4497_s0 + $0xd0] sm:$0x3] }
  0x28   :  { %2898 = vmatpush1.msk.msra.mxu1 %vm88_vm1, %v3696_v31  ;;  %2942 = vmatpush1.msk.msra.mxu0 %vm88_vm1, %v3696_v31  ;;  %v2951_v9 = vld [vmem:[%s4497_s0 + $0x158] sm:$0xff]  ;;  %v2953_v11 = vld [vmem:[%s4497_s0 + $0x168] sm:$0xff]  ;;  %v2952_v12 = vld [vmem:[%s4497_s0 + $0x160] sm:$0xff] }
  0x29   :  { %157 = vmatmul.mubr.f32.vlgmr.msra.gmra.mrb[0].mxu1 %v52_v32  ;;  %3210 = vmatprep.subr.bf16.mxu1 %v3523_v3  ;;  %v2954_v14 = vld [vmem:[%s4497_s0 + $0x170] sm:$0xff]  ;;  %v2957_v15 = vld [vmem:[%s4497_s0 + $0x188] sm:$0xff]  ;;  %v2956_v16 = vld [vmem:[%s4497_s0 + $0x180] sm:$0xff] }
  0x2a   :  { %3212 = vmatpush1.bf16.msra.mxu1 %v3587_v4  ;;  %2900 = vmatprep.mubr.msk.f32.mxu1 %vm66_vm0, %v55_v33  ;;  %v2958_v18 = vld [vmem:[%s4497_s0 + $0x190] sm:$0xff]  ;;  %v2961_v19 = vld [vmem:[%s4497_s0 + $0x1a8] sm:$0xff]  ;;  %v2963_v21 = vld [vmem:[%s4497_s0 + $0x1b8] sm:$0x3] }
  0x2b   :  { %3213 = vmatprep.subr.bf16.mxu1 %v3523_v3  ;;  %436 = vmatmul.mubr.f32.vlgmr.msra.gmra.mrb[0].mxu0 %v2928_v34  ;;  %v2962_v22 = vld [vmem:[%s4497_s0 + $0x1b0] sm:$0x3]  ;;  %v2976_v24 = vld [vmem:[%s4500_s3 + $0x38] sm:$0xff] }
  0x2c   :  { %2944 = vmatprep.mubr.msk.f32.mxu0 %vm66_vm0, %v2931_v36  ;;  %v2975_v27 = vld [vmem:[%s4500_s3 + $0x30] sm:$0xff] }
  0x2d   :  { %162 = vmatmul.mubr.f32.gmra.mrb[2].mxu1 %v54_v35 }
  0x2e   :  { %3215 = vmatpush1.bf16.msra.mxu1 %v3594_v6  ;;  %2901 = vmatprep.mubr.msk.f32.mxu1 %vm66_vm0, %v57_v37 }
  0x2f   :  { %3216 = vmatprep.subr.bf16.mxu1 %v3523_v3  ;;  %441 = vmatmul.mubr.f32.gmra.mrb[2].mxu0 %v2930_v38 }
  0x30   :  { %2945 = vmatprep.mubr.msk.f32.mxu0 %vm66_vm0, %v2933_v40 }
  0x31   :  { %167 = vmatmul.mubr.f32.gmra.mrb[4].mxu1 %v56_v39 }
  0x32   :  { %3218 = vmatpush1.bf16.msra.mxu1 %v3609_v10  ;;  %2902 = vmatprep.mubr.msk.f32.mxu1 %vm66_vm0, %v59_v41 }
  0x33   :  { %3219 = vmatprep.subr.bf16.mxu1 %v3523_v3  ;;  %446 = vmatmul.mubr.f32.gmra.mrb[4].mxu0 %v2932_v42 }
  0x34   :  { %2946 = vmatprep.mubr.msk.f32.mxu0 %vm66_vm0, %v2935_v44 }
  0x35   :  { %172 = vmatmul.mubr.f32.gmra.mrb[6].mxu1 %v58_v43 }
  0x36   :  { %3221 = vmatpush1.bf16.msra.mxu1 %v3622_v13  ;;  %2903 = vmatprep.mubr.msk.f32.mxu1 %vm66_vm0, %v61_v45 }
  0x37   :  { %3222 = vmatprep.subr.bf16.mxu1 %v3523_v3  ;;  %451 = vmatmul.mubr.f32.gmra.mrb[6].mxu0 %v2934_v46 }
  0x38   :  { %2947 = vmatprep.mubr.msk.f32.mxu0 %vm66_vm0, %v2937_v48 }
  0x39   :  { %177 = vmatmul.mubr.f32.gmra.mrb[8].mxu1 %v60_v47 }
  0x3a   :  { %3224 = vmatpush1.bf16.msra.mxu1 %v3638_v17  ;;  %2904 = vmatprep.mubr.msk.f32.mxu1 %vm66_vm0, %v63_v49 }
  0x3b   :  { %3225 = vmatprep.subr.bf16.mxu1 %v3523_v3  ;;  %456 = vmatmul.mubr.f32.gmra.mrb[8].mxu0 %v2936_v50 }
  0x3c   :  { %2948 = vmatprep.mubr.msk.f32.mxu0 %vm66_vm0, %v2939_v52 }
  0x3d   :  { %182 = vmatmul.mubr.f32.gmra.mrb[10].mxu1 %v62_v51 }
  0x3e   :  { %3227 = vmatpush1.bf16.msra.mxu1 %v3650_v20  ;;  %2905 = vmatprep.mubr.msk.f32.mxu1 %vm66_vm0, %v65_v53 }
  0x3f   :  { %3228 = vmatprep.subr.bf16.mxu1 %v3523_v3  ;;  %461 = vmatmul.mubr.f32.gmra.mrb[10].mxu0 %v2938_v54 }
  0x40   :  { %2949 = vmatprep.mubr.msk.f32.mxu0 %vm66_vm0, %v2941_v56 }
  0x41   :  { %187 = vmatmul.mubr.f32.gmra.mrb[12].mxu1 %v64_v55 }
  0x42   :  { %3230 = vmatpush1.bf16.msra.mxu1 %v3662_v23  ;;  %2921 = vmatprep.mubr.msk.f32.mxu1 %vm66_vm0, %v2907_v57 }
  0x43   :  { %3231 = vmatprep.subr.bf16.mxu1 %v3523_v3  ;;  %466 = vmatmul.mubr.f32.gmra.mrb[12].mxu0 %v2940_v58 }
  0x44   :  { %720 = vmatprep.mubr.f32.mxu0 %v3524_v30 }
  0x46   :  { %3233 = vmatpush1.bf16.msra.mxu1 %v3674_v26 }
  0x47   :  { %3234 = vmatprep.subr.bf16.mxu1 %v3523_v3 }
  0x4a   :  { %3236 = vmatpush1.bf16.msra.mxu1 %v3686_v29 }
  0x4b   :  { %264 = vmatprep.subr.mxu1 %v3524_v30 }
  0x4e   :  { %2920 = vmatpush1.msk.msra.mxu1 %vm88_vm1, %v3696_v31 }
  0x4f   :  { %293 = vmatmul.mubr.f32.vlgmr.msra.gmra.mrb[14].mxu1 %v2906_v59  ;;  %3264 = vmatprep.subr.bf16.mxu1 %v3523_v3 }
  0x50   :  { %3266 = vmatpush1.bf16.msra.mxu1 %v3587_v4  ;;  %2922 = vmatprep.mubr.msk.f32.mxu1 %vm66_vm0, %v2909_v60  ;;  %v2914_v4 = vld [vmem:[%s4497_s0 + $0xb0] sm:$0xff] }
  0x51   :  { %3267 = vmatprep.subr.bf16.mxu1 %v3523_v3 }
  0x53   :  { %298 = vmatmul.mubr.f32.gmra.mrb[16].mxu1 %v2908_v61 }
  0x54   :  { %3269 = vmatpush1.bf16.msra.mxu1 %v3594_v6  ;;  %2923 = vmatprep.mubr.msk.f32.mxu1 %vm66_vm0, %v2911_v62  ;;  %v2916_v6 = vld [vmem:[%s4497_s0 + $0xc0] sm:$0xff] }
  0x55   :  { %3270 = vmatprep.subr.bf16.mxu1 %v3523_v3 }
  0x57   :  { %303 = vmatmul.mubr.f32.gmra.mrb[18].mxu1 %v2910_v63 }
  0x58   :  { %3272 = vmatpush1.bf16.msra.mxu1 %v3609_v10  ;;  %2924 = vmatprep.mubr.msk.f32.mxu1 %vm66_vm0, %v2913_v0  ;;  %v2950_v10 = vld [vmem:[%s4497_s0 + $0x150] sm:$0xff] }
  0x59   :  { %3273 = vmatprep.subr.bf16.mxu1 %v3523_v3 }
  0x5b   :  { %308 = vmatmul.mubr.f32.gmra.mrb[20].mxu1 %v2912_v1 }
  0x5c   :  { %3275 = vmatpush1.bf16.msra.mxu1 %v3622_v13  ;;  %2925 = vmatprep.mubr.msk.f32.mxu1 %vm66_vm0, %v2915_v2  ;;  %v2955_v13 = vld [vmem:[%s4497_s0 + $0x178] sm:$0xff] }
  0x5d   :  { %3276 = vmatprep.subr.bf16.mxu1 %v3523_v3 }
  0x5f   :  { %313 = vmatmul.mubr.f32.gmra.mrb[22].mxu1 %v2914_v4 }
  0x60   :  { %3278 = vmatpush1.bf16.msra.mxu1 %v3638_v17  ;;  %2926 = vmatprep.mubr.msk.f32.mxu1 %vm66_vm0, %v2917_v5  ;;  %v2959_v17 = vld [vmem:[%s4497_s0 + $0x198] sm:$0xff] }
  0x61   :  { %3279 = vmatprep.subr.bf16.mxu1 %v3523_v3 }
  0x63   :  { %318 = vmatmul.mubr.f32.gmra.mrb[24].mxu1 %v2916_v6 }
  0x64   :  { %3281 = vmatpush1.bf16.msra.mxu1 %v3650_v20  ;;  %2927 = vmatprep.mubr.msk.f32.mxu1 %vm66_vm0, %v2919_v7  ;;  %v2960_v20 = vld [vmem:[%s4497_s0 + $0x1a0] sm:$0xff] }
  0x65   :  { %3282 = vmatprep.subr.bf16.mxu1 %v3523_v3 }
  0x67   :  { %323 = vmatmul.mubr.f32.gmra.mrb[26].mxu1 %v2918_v8 }
  0x68   :  { %3284 = vmatpush1.bf16.msra.mxu1 %v3662_v23  ;;  %2965 = vmatprep.mubr.msk.f32.mxu1 %vm66_vm0, %v2951_v9  ;;  %v2974_v23 = vld [vmem:[%s4500_s3 + $0x28] sm:$0xff] }
  0x69   :  { %3285 = vmatprep.subr.bf16.mxu1 %v3523_v3  ;;  %v3291_v25 = vpack.c.bf16 %v2976_v24, %v2974_v23 }
  0x6b   :  { %3292 = vmatprep.subr.bf16.mxu0 %v3291_v25 }
  0x6c   :  { %3287 = vmatpush1.bf16.msra.mxu1 %v3674_v26  ;;  %v2973_v26 = vld [vmem:[%s4500_s3 + $0x20] sm:$0xff] }
  0x6d   :  { %3288 = vmatprep.subr.bf16.mxu1 %v3523_v3  ;;  %v3293_v28 = vpack.c.bf16 %v2975_v27, %v2973_v26  ;;  %v3958_v27 = vld [vmem:[%s4499_s2] ss:$0 sm:$0xff] }
  0x6f   :  { %3294 = vmatpush1.bf16.msra.mxu0 %v3293_v28 }
  0x70   :  { %3290 = vmatpush1.bf16.msra.mxu1 %v3686_v29  ;;  %v643_v29 = vld [vmem:[%s4500_s3 + $0x8] sm:$0xff] }
  0x71   :  { %550 = vmatprep.subr.mxu1 %v3524_v30 }
  0x74   :  { %2964 = vmatpush1.msk.msra.mxu1 %vm88_vm1, %v3696_v31  ;;  %v645_v31 = vld [vmem:[%s4500_s3 + $0x18] sm:$0xff] }
  0x75   :  { %579 = vmatmul.mubr.f32.vlgmr.msra.gmra.mrb[28].mxu1 %v2950_v10  ;;  %v3295_v32 = vpack.c.bf16 %v645_v31, %v643_v29 }
  0x76   :  { %2966 = vmatprep.mubr.msk.f32.mxu1 %vm66_vm0, %v2953_v11 }
  0x77   :  { %3296 = vmatprep.subr.bf16.mxu0 %v3295_v32  ;;  %v642_v32 = vld [vmem:[%s4500_s3] sm:$0xff] }
  0x79   :  { %584 = vmatmul.mubr.f32.gmra.mrb[30].mxu1 %v2952_v12 }
  0x7a   :  { %2967 = vmatprep.mubr.msk.f32.mxu1 %vm66_vm0, %v2955_v13 }
  0x7d   :  { %589 = vmatmul.mubr.f32.gmra.mrb[32].mxu1 %v2954_v14 }
  0x7e   :  { %2968 = vmatprep.mubr.msk.f32.mxu1 %vm66_vm0, %v2957_v15 }
  0x81   :  { %594 = vmatmul.mubr.f32.gmra.mrb[34].mxu1 %v2956_v16 }
  0x82   :  { %2969 = vmatprep.mubr.msk.f32.mxu1 %vm66_vm0, %v2959_v17 }
  0x85   :  { %599 = vmatmul.mubr.f32.gmra.mrb[36].mxu1 %v2958_v18 }
  0x86   :  { %2970 = vmatprep.mubr.msk.f32.mxu1 %vm66_vm0, %v2961_v19 }
  0x89   :  { %604 = vmatmul.mubr.f32.gmra.mrb[38].mxu1 %v2960_v20 }
  0x8a   :  { %2971 = vmatprep.mubr.msk.f32.mxu1 %vm66_vm0, %v2963_v21 }
  0x8d   :  { %609 = vmatmul.mubr.f32.gmra.mrb[40].mxu1 %v2962_v22 }
  0xfc   :  { %v158_v33 = vpop.f32.mrb[0].mxu1 }
  0xfd   :  { %v160_v34 = vpop.f32.mrb[1].mxu1 }
  0xfe   :  { %v437_v35 = vpop.f32.mrb[0].mxu0 }
  0xff   :  { %v439_v37 = vpop.f32.mrb[1].mxu0 }
 0x100   :  { %v163_v36 = vpop.f32.mrb[2].mxu1 }
 0x101   :  { %v165_v38 = vpop.f32.mrb[3].mxu1 }
 0x102   :  { %v442_v39 = vpop.f32.mrb[2].mxu0 }
 0x103   :  { %v444_v41 = vpop.f32.mrb[3].mxu0 }
 0x104   :  { %v168_v40 = vpop.f32.mrb[4].mxu1 }
 0x105   :  { %v170_v42 = vpop.f32.mrb[5].mxu1 }
 0x106   :  { %v447_v43 = vpop.f32.mrb[4].mxu0 }
 0x107   :  { %v449_v45 = vpop.f32.mrb[5].mxu0 }
 0x108   :  { %v173_v44 = vpop.f32.mrb[6].mxu1 }
 0x109   :  { %v175_v46 = vpop.f32.mrb[7].mxu1 }
 0x10a   :  { %v452_v47 = vpop.f32.mrb[6].mxu0 }
 0x10b   :  { %v454_v49 = vpop.f32.mrb[7].mxu0 }
 0x10c   :  { %v178_v48 = vpop.f32.mrb[8].mxu1 }
 0x10d   :  { %v180_v50 = vpop.f32.mrb[9].mxu1 }
 0x10e   :  { %v457_v51 = vpop.f32.mrb[8].mxu0  ;;  %v2985_v50 = vld [vmem:[%s4500_s3 + $0x68] sm:$0xff] }
 0x10f   :  { %v459_v53 = vpop.f32.mrb[9].mxu0 }
 0x110   :  { %v183_v52 = vpop.f32.mrb[10].mxu1 }
 0x111   :  { %v185_v54 = vpop.f32.mrb[11].mxu1 }
 0x112   :  { %v462_v55 = vpop.f32.mrb[10].mxu0 }
 0x113   :  { %v464_v57 = vpop.f32.mrb[11].mxu0 }
 0x114   :  { %v188_v56 = vpop.f32.mrb[12].mxu1 }
 0x115   :  { %v190_v58 = vpop.f32.mrb[13].mxu1 }
 0x116   :  { %v467_v59 = vpop.f32.mrb[12].mxu0 }
 0x117   :  { %v469_v60 = vpop.f32.mrb[13].mxu0 }
 0x122   :  { %v294_v61 = vpop.f32.mrb[14].mxu1 }
 0x123   :  { %v328_v62 = vmax.f32 %v158_v33, %v294_v61  ;;  %v296_v63 = vpop.f32.mrb[15].mxu1  ;;  %v644_v33 = vld [vmem:[%s4500_s3 + $0x10] sm:$0xff]  ;;  %v2984_v61 = vld [vmem:[%s4500_s3 + $0x60] sm:$0xff] }
 0x125   :  { %v471_v0 = vmax.f32 %v328_v62, %v437_v35  ;;  %v2980_v35 = vld [vmem:[%s4500_s3 + $0x48] sm:$0xff]  ;;  %v2986_v62 = vld [vmem:[%s4500_s3 + $0x70] sm:$0xff] }
 0x126   :  { %v299_v1 = vpop.f32.mrb[16].mxu1 }
 0x127   :  { %v329_v2 = vmax.f32 %v163_v36, %v299_v1  ;;  %v301_v4 = vpop.f32.mrb[17].mxu1  ;;  %v2982_v36 = vld [vmem:[%s4500_s3 + $0x58] sm:$0xff] }
 0x128   :  { %v3299_v42 = vpack.c.bf16 %v2982_v36, %v2980_v35  ;;  %v2992_v1 = vld [vmem:[%s4500_s3 + $0x98] sm:$0xff]  ;;  %v3004_v36 = vld [vmem:[%s4500_s3 + $0xe0] sm:$0xff] }
 0x129   :  { %v3953_v5 = vmax.f32 %v329_v2, %v442_v39 }
 0x12a   :  { %v304_v6 = vpop.f32.mrb[18].mxu1 }
 0x12b   :  { %v330_v7 = vmax.f32 %v168_v40, %v304_v6  ;;  %v306_v8 = vpop.f32.mrb[19].mxu1  ;;  %v3297_v40 = vpack.c.bf16 %v644_v33, %v642_v32  ;;  %v3007_v32 = vld [vmem:[%s4500_s3 + $0xf8] sm:$0xff] }
 0x12d   :  { %v473_v9 = vmax.f32 %v330_v7, %v447_v43 }
 0x12e   :  { %v309_v10 = vpop.f32.mrb[20].mxu1 }
 0x12f   :  { %v331_v11 = vmax.f32 %v173_v44, %v309_v10  ;;  %v311_v12 = vpop.f32.mrb[21].mxu1 }
 0x131   :  { %v474_v13 = vmax.f32 %v331_v11, %v452_v47  ;;  %v2979_v47 = vld [vmem:[%s4500_s3 + $0x40] sm:$0xff] }
 0x132   :  { %v314_v14 = vpop.f32.mrb[22].mxu1 }
 0x133   :  { %v332_v15 = vmax.f32 %v178_v48, %v314_v14  ;;  %v316_v16 = vpop.f32.mrb[23].mxu1  ;;  %v2981_v48 = vld [vmem:[%s4500_s3 + $0x50] sm:$0xff] }
 0x134   :  { %v3301_v54 = vpack.c.bf16 %v2981_v48, %v2979_v47  ;;  %v2991_v14 = vld [vmem:[%s4500_s3 + $0x90] sm:$0xff]  ;;  %v2997_v16 = vld [vmem:[%s4500_s3 + $0xb8] sm:$0xff] }
 0x135   :  { %v475_v17 = vmax.f32 %v332_v15, %v457_v51  ;;  %v2987_v51 = vld [vmem:[%s4500_s3 + $0x78] sm:$0xff]  ;;  %v2995_v15 = vld [vmem:[%s4500_s3 + $0xa8] sm:$0xff] }
 0x136   :  { %v319_v18 = vpop.f32.mrb[24].mxu1  ;;  %v3017_v47 = vld [vmem:[%s4500_s3 + $0x138] sm:$0xff] }
 0x137   :  { %v333_v19 = vmax.f32 %v183_v52, %v319_v18  ;;  %v321_v20 = vpop.f32.mrb[25].mxu1 }
 0x139   :  { %v476_v21 = vmax.f32 %v333_v19, %v462_v55  ;;  %v3311_v19 = vpack.c.bf16 %v2997_v16, %v2995_v15 }
 0x13a   :  { %v324_v22 = vpop.f32.mrb[26].mxu1 }
 0x13b   :  { %v334_v23 = vmax.f32 %v188_v56, %v324_v22  ;;  %v326_v24 = vpop.f32.mrb[27].mxu1  ;;  %v3303_v56 = vpack.c.bf16 %v2987_v51, %v2985_v50  ;;  %v2996_v22 = vld [vmem:[%s4500_s3 + $0xb0] sm:$0xff]  ;;  %v3014_v51 = vld [vmem:[%s4500_s3 + $0x120] sm:$0xff] }
 0x13c   :  { %v3002_v24 = vld [vmem:[%s4500_s3 + $0xd8] sm:$0xff] }
 0x13d   :  { %v477_v25 = vmax.f32 %v334_v23, %v467_v59  ;;  %v3000_v23 = vld [vmem:[%s4500_s3 + $0xc8] sm:$0xff] }
 0x148   :  { %v580_v26 = vpop.f32.mrb[28].mxu1 }
 0x149   :  { %v614_v28 = vmax.f32 %v471_v0, %v580_v26  ;;  %v582_v29 = vpop.f32.mrb[29].mxu1  ;;  %v2990_v0 = vld [vmem:[%s4500_s3 + $0x88] sm:$0xff] }
 0x14a   :  { %v3307_v8 = vpack.c.bf16 %v2992_v1, %v2990_v0  ;;  %v3001_v29 = vld [vmem:[%s4500_s3 + $0xd0] sm:$0xff]  ;;  %v2680_v1 = vld [vmem:[%s4502_s5 + $0x8] sm:$0xff] }
 0x14b   :  { %v628_v31 = vadd.f32 %v3958_v27, %v614_v28  ;;  %v2999_v28 = vld [vmem:[%s4500_s3 + $0xc0] sm:$0xff] }
 0x14c   :  { %v3967_v34 = vpop.f32.mrb[30].mxu1  ;;  %v3317_v33 = vpack.c.bf16 %v3001_v29, %v2999_v28  ;;  %v3024_v28 = vld [vmem:[%s4500_s3 + $0x160] sm:$0xff]  ;;  %v3026_v29 = vld [vmem:[%s4500_s3 + $0x170] sm:$0xff] }
 0x14d   :  { %v635_v37 = vmax.f32 %v628_v31, 0.0  ;;  %v615_v38 = vmax.f32 %v3953_v5, %v3967_v34  ;;  %v587_v39 = vpop.f32.mrb[31].mxu1  ;;  %v3305_v5 = vpack.c.bf16 %v2986_v62, %v2984_v61  ;;  %v3005_v31 = vld [vmem:[%s4500_s3 + $0xe8] sm:$0xff]  ;;  %v3021_v61 = vld [vmem:[%s4500_s3 + $0x150] sm:$0xff]  ;;  %v2695_v62 = vld [vmem:[%s4502_s5 + $0x80] sm:$0xff] }
 0x14e   :  { %v3319_v35 = vpack.c.bf16 %v3007_v32, %v3005_v31  ;;  %v3012_v39 = vld [vmem:[%s4500_s3 + $0x118] sm:$0xff]  ;;  %v3030_v31 = vld [vmem:[%s4500_s3 + $0x188] sm:$0xff] }
 0x14f   :  { %v652_v41 = vrot.slane %v635_v37, 2  ;;  %v805_v6 = vrot.slane %v635_v37, 4  ;;  %v886_v18 = vrot.slane %v635_v37, 6  ;;  %v629_v20 = vadd.f32 %v3958_v27, %v615_v38  ;;  %v3010_v38 = vld [vmem:[%s4500_s3 + $0x108] sm:$0xff]  ;;  %v3032_v32 = vld [vmem:[%s4500_s3 + $0x198] sm:$0xff] }
 0x150   :  { %v590_v43 = vpop.f32.mrb[32].mxu1 }
 0x151   :  { %v616_v44 = vmax.f32 %v473_v9, %v590_v43  ;;  %2977 = vmatmul.mubr.msk.f32.vlgmr.msra.gmra.mrb[14].mxu0 %vm653_vm2, %v652_v41  ;;  %v592_v45 = vpop.f32.mrb[33].mxu1  ;;  %v636_v26 = vmax.f32 %v629_v20, 0.0  ;;  %v3009_v43 = vld [vmem:[%s4500_s3 + $0x100] sm:$0xff] }
 0x152   :  { %3298 = vmatpush1.bf16.msra.mxu0 %v3297_v40  ;;  %793 = vmatprep.mubr.f32.mxu0 %v3524_v30  ;;  %v3015_v45 = vld [vmem:[%s4500_s3 + $0x128] sm:$0xff] }
 0x153   :  { %v3980_v46 = vadd.f32 %v3958_v27, %v616_v44  ;;  %3300 = vmatprep.subr.bf16.mxu0 %v3299_v42  ;;  %v1048_v34 = vrot.slane %v636_v26, 2  ;;  %v1129_v41 = vrot.slane %v636_v26, 4  ;;  %v3323_v42 = vpack.c.bf16 %v3012_v39, %v3010_v38  ;;  %v3011_v44 = vld [vmem:[%s4500_s3 + $0x110] sm:$0xff]  ;;  %v2688_v38 = vld [vmem:[%s4502_s5 + $0x48] sm:$0xff] }
 0x154   :  { %v595_v49 = vpop.f32.mrb[34].mxu1  ;;  %v3325_v48 = vpack.c.bf16 %v3011_v44, %v3009_v43  ;;  %v3327_v50 = vpack.c.bf16 %v3017_v47, %v3015_v45  ;;  %v2706_v43 = vld [vmem:[%s4502_s5 + $0xd8] sm:$0xff]  ;;  %v2689_v47 = vld [vmem:[%s4502_s5 + $0x50] sm:$0xff] }
 0x155   :  { %v617_v52 = vmax.f32 %v474_v13, %v595_v49  ;;  %v597_v53 = vpop.f32.mrb[35].mxu1  ;;  %v2989_v13 = vld [vmem:[%s4500_s3 + $0x80] sm:$0xff]  ;;  %v1210_v49 = vrot.slane %v636_v26, 6 }
 0x156   :  { %v3020_v53 = vld [vmem:[%s4500_s3 + $0x148] sm:$0xff] }
 0x157   :  { %v3995_v55 = vadd.f32 %v3958_v27, %v617_v52  ;;  %v3016_v52 = vld [vmem:[%s4500_s3 + $0x130] sm:$0xff] }
 0x158   :  { %v600_v57 = vpop.f32.mrb[36].mxu1 }
 0x159   :  { %v618_v58 = vmax.f32 %v475_v17, %v600_v57  ;;  %2978 = vmatmul.mubr.msk.f32.vlgmr.msra.gmra.mrb[14].mxu0 %vm653_vm2, %v635_v37  ;;  %v602_v59 = vpop.f32.mrb[37].mxu1  ;;  %v3309_v17 = vpack.c.bf16 %v2991_v14, %v2989_v13  ;;  %v3006_v37 = vld [vmem:[%s4500_s3 + $0xf0] sm:$0xff]  ;;  %v4106_v57 = vmax.f32 %v3980_v46, 0.0  ;;  %v2696_v46 = vld [vmem:[%s4502_s5 + $0x88] sm:$0xff]  ;;  %v2699_v13 = vld [vmem:[%s4502_s5 + $0xa0] sm:$0xff] }
 0x15a   :  { %3302 = vmatpush1.bf16.msra.mxu0 %v3301_v54  ;;  %872 = vmatprep.mubr.f32.mxu0 %v3524_v30  ;;  %v3321_v40 = vpack.c.bf16 %v3006_v37, %v3004_v36  ;;  %v3022_v54 = vld [vmem:[%s4500_s3 + $0x158] sm:$0xff]  ;;  %v3019_v59 = vld [vmem:[%s4500_s3 + $0x140] sm:$0xff]  ;;  %v3391_v0 = vpack.c.bf16 %v2696_v46, %v2695_v62  ;;  %v2700_v14 = vld [vmem:[%s4502_s5 + $0xa8] sm:$0xff]  ;;  %v3337_v36 = vpack.c.bf16 %v3026_v29, %v3024_v28 }
 0x15b   :  { %v4000_v60 = vadd.f32 %v3958_v27, %v618_v58  ;;  %3304 = vmatprep.subr.bf16.mxu0 %v3303_v56  ;;  %v3329_v56 = vpack.c.bf16 %v3016_v52, %v3014_v51  ;;  %v3331_v58 = vpack.c.bf16 %v3022_v54, %v3020_v53  ;;  %v3333_v16 = vpack.c.bf16 %v3021_v61, %v3019_v59  ;;  %v2687_v37 = vld [vmem:[%s4502_s5 + $0x40] sm:$0xff]  ;;  %v3035_v51 = vld [vmem:[%s4500_s3 + $0x1a8] sm:$0xff]  ;;  %v3037_v52 = vld [vmem:[%s4500_s3 + $0x1b8] sm:$0xff] }
 0x15c   :  { %v605_v63 = vpop.f32.mrb[38].mxu1  ;;  %3392 = vmatprep.subr.bf16.mxu1 %v3391_v0  ;;  %v1453_v39 = vrot.slane %v4106_v57, 4  ;;  %v3409_v44 = vpack.c.bf16 %v2688_v38, %v2687_v37  ;;  %v2707_v53 = vld [vmem:[%s4502_s5 + $0xe0] sm:$0xff]  ;;  %v2708_v54 = vld [vmem:[%s4502_s5 + $0xe8] sm:$0xff]  ;;  %v1534_v59 = vrot.slane %v4106_v57, 6  ;;  %v3343_v61 = vpack.c.bf16 %v3037_v52, %v3035_v51  ;;  %v3042_v0 = vld [vmem:[%s4500_s3 + $0x1d8] sm:$0xff] }
 0x15d   :  { %v619_v2 = vmax.f32 %v476_v21, %v605_v63  ;;  %v607_v4 = vpop.f32.mrb[39].mxu1  ;;  %v2994_v21 = vld [vmem:[%s4500_s3 + $0xa0] sm:$0xff]  ;;  %v3415_v62 = vpack.c.bf16 %v2708_v54, %v2707_v53  ;;  %v3056_v28 = vld [vmem:[%s4500_s3 + $0x230] sm:$0xff]  ;;  %v3060_v29 = vld [vmem:[%s4500_s3 + $0x248] sm:$0xff] }
 0x15e   :  { %v2679_v63 = vld [vmem:[%s4502_s5] sm:$0xff]  ;;  %v2698_v4 = vld [vmem:[%s4502_s5 + $0x98] sm:$0xff]  ;;  %v3065_v37 = vld [vmem:[%s4500_s3 + $0x268] sm:$0xff] }
 0x15f   :  { %v4015_v7 = vadd.f32 %v3958_v27, %v619_v2  ;;  %v2697_v2 = vld [vmem:[%s4502_s5 + $0x90] sm:$0xff]  ;;  %v3034_v46 = vld [vmem:[%s4500_s3 + $0x1a0] sm:$0xff]  ;;  %v3075_v51 = vld [vmem:[%s4500_s3 + $0x2a8] sm:$0xff] }
 0x160   :  { %v610_v9 = vpop.f32.mrb[40].mxu1  ;;  %v3077_v52 = vld [vmem:[%s4500_s3 + $0x2b8] sm:$0xff] }
 0x161   :  { %v620_v10 = vmax.f32 %v477_v25, %v610_v9  ;;  %2983 = vmatmul.mubr.msk.f32.vlgmr.msra.gmra.mrb[14].mxu0 %vm653_vm2, %v805_v6  ;;  %v612_v11 = vpop.f32.mrb[41].mxu1  ;;  %v3313_v25 = vpack.c.bf16 %v2996_v22, %v2994_v21  ;;  %v3393_v6 = vpack.c.bf16 %v2680_v1, %v2679_v63  ;;  %v2681_v9 = vld [vmem:[%s4502_s5 + $0x10] sm:$0xff]  ;;  %v3399_v21 = vpack.c.bf16 %v2700_v14, %v2699_v13  ;;  %v3044_v13 = vld [vmem:[%s4500_s3 + $0x1e0] sm:$0xff] }
 0x162   :  { %3306 = vmatpush1.bf16.msra.mxu0 %v3305_v5  ;;  %953 = vmatprep.mubr.f32.mxu0 %v3524_v30  ;;  %v3025_v5 = vld [vmem:[%s4500_s3 + $0x168] sm:$0xff]  ;;  %v3027_v11 = vld [vmem:[%s4500_s3 + $0x178] sm:$0xff]  ;;  %v2701_v22 = vld [vmem:[%s4502_s5 + $0xb0] sm:$0xff] }
 0x163   :  { %v4020_v12 = vadd.f32 %v3958_v27, %v620_v10  ;;  %3308 = vmatprep.subr.bf16.mxu0 %v3307_v8  ;;  %v3315_v27 = vpack.c.bf16 %v3002_v24, %v3000_v23  ;;  %v3395_v8 = vpack.c.bf16 %v2698_v4, %v2697_v2  ;;  %v2682_v10 = vld [vmem:[%s4502_s5 + $0x18] sm:$0xff]  ;;  %3394 = vmatpush3.bf16.msra.mxu1 %v3393_v6  ;;  %v3036_v63 = vld [vmem:[%s4500_s3 + $0x1b0] sm:$0xff]  ;;  %v638_v2 = vmax.f32 %v3995_v55, 0.0 }
 0x164   :  { %v3397_v15 = vpack.c.bf16 %v2682_v10, %v2681_v9  ;;  %v3335_v20 = vpack.c.bf16 %v3027_v11, %v3025_v5  ;;  %v2702_v23 = vld [vmem:[%s4502_s5 + $0xb8] sm:$0xff]  ;;  %v3345_v1 = vpack.c.bf16 %v3036_v63, %v3034_v46  ;;  %v3039_v5 = vld [vmem:[%s4500_s3 + $0x1c0] sm:$0xff]  ;;  %v3041_v6 = vld [vmem:[%s4500_s3 + $0x1d0] sm:$0xff]  ;;  %v640_v63 = vmax.f32 %v4015_v7, 0.0 }
 0x165   :  { %3396 = vmatprep.subr.bf16.mxu1 %v3395_v8  ;;  %v3045_v8 = vld [vmem:[%s4500_s3 + $0x1e8] sm:$0xff]  ;;  %v3047_v55 = vld [vmem:[%s4500_s3 + $0x1f8] sm:$0xff]  ;;  %v3349_v9 = vpack.c.bf16 %v3041_v6, %v3039_v5  ;;  %v1696_v10 = vrot.slane %v638_v2, 2  ;;  %v3046_v14 = vld [vmem:[%s4500_s3 + $0x1f0] sm:$0xff] }
 0x166   :  { %v3351_v11 = vpack.c.bf16 %v3047_v55, %v3045_v8  ;;  %v3087_v7 = vld [vmem:[%s4500_s3 + $0x2f8] sm:$0xff]  ;;  %v2344_v5 = vrot.slane %v640_v63, 2  ;;  %v3084_v8 = vld [vmem:[%s4500_s3 + $0x2e0] sm:$0xff]  ;;  %v3086_v55 = vld [vmem:[%s4500_s3 + $0x2f0] sm:$0xff] }
 0x167   :  { %3398 = vmatpush3.bf16.msra.mxu1 %v3397_v15  ;;  %v3050_v15 = vld [vmem:[%s4500_s3 + $0x208] sm:$0xff] }
 0x168   :  { %3400 = vmatprep.subr.bf16.mxu1 %v3399_v21  ;;  %v3051_v21 = vld [vmem:[%s4500_s3 + $0x210] sm:$0xff] }
 0x169   :  { %2988 = vmatmul.mubr.msk.f32.vlgmr.msra.gmra.mrb[14].mxu0 %vm653_vm2, %v886_v18  ;;  %v2684_v18 = vld [vmem:[%s4502_s5 + $0x28] sm:$0xff] }
 0x16a   :  { %3310 = vmatpush1.bf16.msra.mxu0 %v3309_v17  ;;  %1034 = vmatprep.mubr.f32.mxu0 %v3524_v30  ;;  %v2683_v17 = vld [vmem:[%s4502_s5 + $0x20] sm:$0xff] }
 0x16b   :  { %3312 = vmatprep.subr.bf16.mxu0 %v3311_v19  ;;  %v1372_v19 = vrot.slane %v4106_v57, 2  ;;  %v3401_v24 = vpack.c.bf16 %v2684_v18, %v2683_v17  ;;  %v3353_v17 = vpack.c.bf16 %v3046_v14, %v3044_v13  ;;  %v1777_v18 = vrot.slane %v638_v2, 4 }
 0x16c   :  { %v2425_v13 = vrot.slane %v640_v63, 4 }
 0x16d   :  { %3402 = vmatpush3.bf16.msra.mxu1 %v3401_v24 }
 0x171   :  { %2993 = vmatmul.mubr.msk.f32.vlgmr.msra.gmra.mrb[14].mxu0 %vm653_vm2, %v636_v26  ;;  %v2685_v26 = vld [vmem:[%s4502_s5 + $0x30] sm:$0xff] }
 0x172   :  { %3314 = vmatpush1.bf16.msra.mxu0 %v3313_v25  ;;  %1115 = vmatprep.mubr.f32.mxu0 %v3524_v30  ;;  %v3403_v25 = vpack.c.bf16 %v2702_v23, %v2701_v22  ;;  %v3055_v22 = vld [vmem:[%s4500_s3 + $0x228] sm:$0xff]  ;;  %v3057_v23 = vld [vmem:[%s4500_s3 + $0x238] sm:$0xff] }
 0x173   :  { %3316 = vmatprep.subr.bf16.mxu0 %v3315_v27  ;;  %v2686_v27 = vld [vmem:[%s4502_s5 + $0x38] sm:$0xff] }
 0x174   :  { %3404 = vmatprep.subr.bf16.mxu1 %v3403_v25  ;;  %v1858_v25 = vrot.slane %v638_v2, 6 }
 0x179   :  { %2998 = vmatmul.mubr.msk.f32.vlgmr.msra.gmra.mrb[14].mxu0 %vm653_vm2, %v1048_v34  ;;  %v2704_v34 = vld [vmem:[%s4502_s5 + $0xc8] sm:$0xff] }
 0x17a   :  { %3318 = vmatpush1.bf16.msra.mxu0 %v3317_v33  ;;  %1196 = vmatprep.mubr.f32.mxu0 %v3524_v30  ;;  %v2703_v33 = vld [vmem:[%s4502_s5 + $0xc0] sm:$0xff] }
 0x17b   :  { %3320 = vmatprep.subr.bf16.mxu0 %v3319_v35  ;;  %v3405_v35 = vpack.c.bf16 %v2686_v27, %v2685_v26  ;;  %v3359_v26 = vpack.c.bf16 %v3057_v23, %v3055_v22  ;;  %v3054_v27 = vld [vmem:[%s4500_s3 + $0x220] sm:$0xff]  ;;  %v2709_v23 = vld [vmem:[%s4502_s5 + $0xf0] sm:$0xff] }
 0x17d   :  { %3406 = vmatpush3.bf16.msra.mxu1 %v3405_v35  ;;  %v3059_v35 = vld [vmem:[%s4500_s3 + $0x240] sm:$0xff] }
 0x181   :  { %3003 = vmatmul.mubr.msk.f32.vlgmr.msra.gmra.mrb[14].mxu0 %vm653_vm2, %v1129_v41  ;;  %v3407_v41 = vpack.c.bf16 %v2704_v34, %v2703_v33  ;;  %v639_v33 = vmax.f32 %v4000_v60, 0.0  ;;  %v3067_v60 = vld [vmem:[%s4500_s3 + $0x278] sm:$0xff] }
 0x182   :  { %3322 = vmatpush1.bf16.msra.mxu0 %v3321_v40  ;;  %1277 = vmatprep.mubr.f32.mxu0 %v3524_v30  ;;  %v3339_v40 = vpack.c.bf16 %v3032_v32, %v3030_v31  ;;  %v3062_v31 = vld [vmem:[%s4500_s3 + $0x258] sm:$0xff]  ;;  %v3361_v32 = vpack.c.bf16 %v3056_v28, %v3054_v27  ;;  %v2665_v28 = vlaneseq }
 0x183   :  { %3324 = vmatprep.subr.bf16.mxu0 %v3323_v42  ;;  %v2705_v42 = vld [vmem:[%s4502_s5 + $0xd0] sm:$0xff]  ;;  %3408 = vmatprep.subr.bf16.mxu1 %v3407_v41  ;;  %v3363_v34 = vpack.c.bf16 %v3062_v31, %v3060_v29  ;;  %v3064_v41 = vld [vmem:[%s4500_s3 + $0x260] sm:$0xff]  ;;  %v2182_v54 = vrot.slane %v639_v33, 6 }
 0x184   :  { %v3411_v45 = vpack.c.bf16 %v2706_v43, %v2705_v42  ;;  %3410 = vmatpush3.bf16.msra.mxu1 %v3409_v44  ;;  %v3066_v42 = vld [vmem:[%s4500_s3 + $0x270] sm:$0xff]  ;;  %v3070_v43 = vld [vmem:[%s4500_s3 + $0x288] sm:$0xff]  ;;  %v3072_v44 = vld [vmem:[%s4500_s3 + $0x298] sm:$0xff]  ;;  %v2666_v29 = vshrl.u32 %v2665_v28, 7 }
 0x186   :  { %3412 = vmatprep.subr.bf16.mxu1 %v3411_v45  ;;  %v3369_v45 = vpack.c.bf16 %v3066_v42, %v3064_v41  ;;  %v2667_v31 = vsub.s32 0, %v2666_v29 }
 0x189   :  { %3008 = vmatmul.mubr.msk.f32.vlgmr.msra.gmra.mrb[14].mxu0 %vm653_vm2, %v1210_v49  ;;  %v3029_v49 = vld [vmem:[%s4500_s3 + $0x180] sm:$0xff] }
 0x18a   :  { %3326 = vmatpush1.bf16.msra.mxu0 %v3325_v48  ;;  %1358 = vmatprep.mubr.f32.mxu0 %v3524_v30  ;;  %v2690_v48 = vld [vmem:[%s4502_s5 + $0x58] sm:$0xff] }
 0x18b   :  { %3328 = vmatprep.subr.bf16.mxu0 %v3327_v50  ;;  %v3031_v50 = vld [vmem:[%s4500_s3 + $0x190] sm:$0xff] }
 0x191   :  { %3013 = vmatmul.mubr.msk.f32.vlgmr.msra.gmra.mrb[14].mxu0 %vm653_vm2, %v4106_v57  ;;  %v3040_v57 = vld [vmem:[%s4500_s3 + $0x1c8] sm:$0xff] }
 0x192   :  { %3330 = vmatpush1.bf16.msra.mxu0 %v3329_v56  ;;  %1439 = vmatprep.mubr.f32.mxu0 %v3524_v30  ;;  %v3413_v56 = vpack.c.bf16 %v2690_v48, %v2689_v47  ;;  %v3347_v4 = vpack.c.bf16 %v3042_v0, %v3040_v57  ;;  %v2101_v47 = vrot.slane %v639_v33, 4  ;;  %v3371_v48 = vpack.c.bf16 %v3072_v44, %v3070_v43  ;;  %v3079_v0 = vld [vmem:[%s4500_s3 + $0x2c0] sm:$0xff]  ;;  %v2791_v44 = vld [vmem:[%s4504_s7 + $0x10] sm:$0xff] }
 0x193   :  { %3332 = vmatprep.subr.bf16.mxu0 %v3331_v58  ;;  %v3341_v58 = vpack.c.bf16 %v3031_v50, %v3029_v49  ;;  %v3069_v49 = vld [vmem:[%s4500_s3 + $0x280] sm:$0xff]  ;;  %v3071_v50 = vld [vmem:[%s4500_s3 + $0x290] sm:$0xff] }
 0x194   :  { %3414 = vmatpush3.bf16.msra.mxu1 %v3413_v56  ;;  %v3373_v53 = vpack.c.bf16 %v3071_v50, %v3069_v49  ;;  %v3375_v56 = vpack.c.bf16 %v3077_v52, %v3075_v51  ;;  %v2794_v49 = vld [vmem:[%s4504_s7 + $0x28] sm:$0xff]  ;;  %v2795_v51 = vld [vmem:[%s4504_s7 + $0x30] sm:$0xff]  ;;  %v2796_v52 = vld [vmem:[%s4504_s7 + $0x38] sm:$0xff] }
 0x195   :  { %3416 = vmatprep.subr.bf16.mxu1 %v3415_v62  ;;  %v3082_v62 = vld [vmem:[%s4500_s3 + $0x2d8] sm:$0xff] }
 0x199   :  { %3018 = vmatmul.mubr.msk.f32.vlgmr.msra.gmra.mrb[14].mxu0 %vm653_vm2, %v1372_v19 }
 0x19a   :  { %3334 = vmatpush1.bf16.msra.mxu0 %v3333_v16  ;;  %1520 = vmatprep.mubr.f32.mxu0 %v3524_v30  ;;  %v3052_v16 = vld [vmem:[%s4500_s3 + $0x218] sm:$0xff] }
 0x19b   :  { %3336 = vmatprep.subr.bf16.mxu0 %v3335_v20  ;;  %v3355_v19 = vpack.c.bf16 %v3052_v16, %v3050_v15  ;;  %v3049_v20 = vld [vmem:[%s4500_s3 + $0x200] sm:$0xff]  ;;  %v3091_v16 = vld [vmem:[%s4500_s3 + $0x310] sm:$0xff] }
 0x19c   :  { %v3357_v24 = vpack.c.bf16 %v3051_v21, %v3049_v20  ;;  %v3089_v15 = vld [vmem:[%s4500_s3 + $0x300] sm:$0xff]  ;;  %v2692_v21 = vld [vmem:[%s4502_s5 + $0x68] sm:$0xff] }
 0x19d   :  { %v2691_v20 = vld [vmem:[%s4502_s5 + $0x60] sm:$0xff] }
 0x19e   :  { %v3417_v22 = vpack.c.bf16 %v2692_v21, %v2691_v20 }
 0x1a0   :  { %3418 = vmatpush3.bf16.msra.mxu1 %v3417_v22 }
 0x1a1   :  { %3023 = vmatmul.mubr.msk.f32.vlgmr.msra.gmra.mrb[14].mxu0 %vm653_vm2, %v1453_v39  ;;  %v2020_v39 = vrot.slane %v639_v33, 2 }
 0x1a2   :  { %3338 = vmatpush1.bf16.msra.mxu0 %v3337_v36  ;;  %1601 = vmatprep.mubr.f32.mxu0 %v3524_v30  ;;  %v3061_v36 = vld [vmem:[%s4500_s3 + $0x250] sm:$0xff] }
 0x1a3   :  { %3340 = vmatprep.subr.bf16.mxu0 %v3339_v40  ;;  %v3365_v38 = vpack.c.bf16 %v3061_v36, %v3059_v35  ;;  %v3367_v40 = vpack.c.bf16 %v3067_v60, %v3065_v37 }
 0x1a9   :  { %3028 = vmatmul.mubr.msk.f32.vlgmr.msra.gmra.mrb[14].mxu0 %vm653_vm2, %v1534_v59  ;;  %v3076_v59 = vld [vmem:[%s4500_s3 + $0x2b0] sm:$0xff] }
 0x1aa   :  { %3342 = vmatpush1.bf16.msra.mxu0 %v3341_v58  ;;  %1682 = vmatprep.mubr.f32.mxu0 %v3524_v30  ;;  %v3074_v58 = vld [vmem:[%s4500_s3 + $0x2a0] sm:$0xff] }
 0x1ab   :  { %3344 = vmatprep.subr.bf16.mxu0 %v3343_v61  ;;  %v3080_v61 = vld [vmem:[%s4500_s3 + $0x2c8] sm:$0xff]  ;;  %v3377_v46 = vpack.c.bf16 %v3076_v59, %v3074_v58  ;;  %v2799_v59 = vld [vmem:[%s4504_s7 + $0x50] sm:$0xff] }
 0x1ac   :  { %v3379_v57 = vpack.c.bf16 %v3082_v62, %v3080_v61  ;;  %v2800_v61 = vld [vmem:[%s4504_s7 + $0x58] sm:$0xff] }
 0x1ad   :  { %v3439_v62 = vpack.c.bf16 %v2800_v61, %v2799_v59 }
 0x1b1   :  { %3033 = vmatmul.mubr.msk.f32.vlgmr.msra.gmra.mrb[14].mxu0 %vm653_vm2, %v638_v2  ;;  %v3085_v2 = vld [vmem:[%s4500_s3 + $0x2e8] sm:$0xff] }
 0x1b2   :  { %3346 = vmatpush1.bf16.msra.mxu0 %v3345_v1  ;;  %1763 = vmatprep.mubr.f32.mxu0 %v3524_v30  ;;  %v3081_v1 = vld [vmem:[%s4500_s3 + $0x2d0] sm:$0xff]  ;;  %v3383_v6 = vpack.c.bf16 %v3087_v7, %v3085_v2 }
 0x1b3   :  { %3348 = vmatprep.subr.bf16.mxu0 %v3347_v4  ;;  %v3381_v4 = vpack.c.bf16 %v3081_v1, %v3079_v0  ;;  %v2803_v0 = vld [vmem:[%s4504_s7 + $0x70] sm:$0xff]  ;;  %v2804_v1 = vld [vmem:[%s4504_s7 + $0x78] sm:$0xff] }
 0x1b4   :  { %v3445_v2 = vpack.c.bf16 %v2804_v1, %v2803_v0 }
 0x1b9   :  { %3038 = vmatmul.mubr.msk.f32.vlgmr.msra.gmra.mrb[14].mxu0 %vm653_vm2, %v1696_v10  ;;  %v3092_v10 = vld [vmem:[%s4500_s3 + $0x318] sm:$0xff] }
 0x1ba   :  { %3350 = vmatpush1.bf16.msra.mxu0 %v3349_v9  ;;  %1844 = vmatprep.mubr.f32.mxu0 %v3524_v30  ;;  %v3090_v9 = vld [vmem:[%s4500_s3 + $0x308] sm:$0xff] }
 0x1bb   :  { %3352 = vmatprep.subr.bf16.mxu0 %v3351_v11  ;;  %v3385_v11 = vpack.c.bf16 %v3086_v55, %v3084_v8  ;;  %v3387_v14 = vpack.c.bf16 %v3092_v10, %v3090_v9  ;;  %v3095_v55 = vld [vmem:[%s4505_s8] ss:$0 sm:$0xff] }
 0x1c1   :  { %3043 = vmatmul.mubr.msk.f32.vlgmr.msra.gmra.mrb[14].mxu0 %vm653_vm2, %v1777_v18  ;;  %v2506_v18 = vrot.slane %v640_v63, 6 }
 0x1c2   :  { %3354 = vmatpush1.bf16.msra.mxu0 %v3353_v17  ;;  %1925 = vmatprep.mubr.f32.mxu0 %v3524_v30  ;;  %v3389_v17 = vpack.c.bf16 %v3091_v16, %v3089_v15 }
 0x1c3   :  { %3356 = vmatprep.subr.bf16.mxu0 %v3355_v19  ;;  %v641_v19 = vmax.f32 %v4020_v12, 0.0  ;;  %v2710_v12 = vld [vmem:[%s4502_s5 + $0xf8] sm:$0xff] }
 0x1c9   :  { %3048 = vmatmul.mubr.msk.f32.vlgmr.msra.gmra.mrb[14].mxu0 %vm653_vm2, %v1858_v25  ;;  %v2693_v25 = vld [vmem:[%s4502_s5 + $0x70] sm:$0xff] }
 0x1ca   :  { %3358 = vmatpush1.bf16.msra.mxu0 %v3357_v24  ;;  %2006 = vmatprep.mubr.f32.mxu0 %v3524_v30  ;;  %v3419_v24 = vpack.c.bf16 %v2710_v12, %v2709_v23 }
 0x1cb   :  { %3360 = vmatprep.subr.bf16.mxu0 %v3359_v26  ;;  %v2694_v26 = vld [vmem:[%s4502_s5 + $0x78] sm:$0xff] }
 0x1cc   :  { %v3421_v27 = vpack.c.bf16 %v2694_v26, %v2693_v25  ;;  %3420 = vmatprep.subr.bf16.mxu1 %v3419_v24 }
 0x1ce   :  { %3422 = vmatpush3.bf16.msra.mxu1 %v3421_v27 }
 0x1cf   :  { %3423 = vmatprep.subr.bf16.mxu1 %v3523_v3 }
 0x1d1   :  { %3053 = vmatmul.mubr.msk.f32.vlgmr.msra.gmra.mrb[14].mxu0 %vm653_vm2, %v639_v33  ;;  %v2671_v33 = vsub.s32 1, %v2666_v29 }
 0x1d2   :  { %3362 = vmatpush1.bf16.msra.mxu0 %v3361_v32  ;;  %2087 = vmatprep.mubr.f32.mxu0 %v3524_v30  ;;  %v2663_v32 = vld [vmem:[%s4501_s4] sm:$0x3] }
 0x1d3   :  { %3364 = vmatprep.subr.bf16.mxu0 %v3363_v34  ;;  %v2668_v34 = vrot.slane %v2663_v32, %v2667_v31  ;;  %v2672_v35 = vrot.slane %v2663_v32, %v2671_v33 }
 0x1d9   :  { %3058 = vmatmul.mubr.msk.f32.vlgmr.msra.gmra.mrb[14].mxu0 %vm653_vm2, %v2020_v39  ;;  %v2790_v39 = vld [vmem:[%s4504_s7 + $0x8] sm:$0xff] }
 0x1da   :  { %3366 = vmatpush1.bf16.msra.mxu0 %v3365_v38  ;;  %2168 = vmatprep.mubr.f32.mxu0 %v3524_v30  ;;  %v2789_v38 = vld [vmem:[%s4504_s7] sm:$0xff] }
 0x1db   :  { %3368 = vmatprep.subr.bf16.mxu0 %v3367_v40  ;;  %v3424_v42 = vpack.c.bf16 %v2790_v39, %v2789_v38 }
 0x1e1   :  { %3063 = vmatmul.mubr.msk.f32.vlgmr.msra.gmra.mrb[14].mxu0 %vm653_vm2, %v2101_v47 }
 0x1e2   :  { %3370 = vmatpush1.bf16.msra.mxu0 %v3369_v45  ;;  %2249 = vmatprep.mubr.f32.mxu0 %v3524_v30  ;;  %v2792_v45 = vld [vmem:[%s4504_s7 + $0x18] sm:$0xff] }
 0x1e3   :  { %3372 = vmatprep.subr.bf16.mxu0 %v3371_v48  ;;  %v3427_v47 = vpack.c.bf16 %v2792_v45, %v2791_v44  ;;  %v2793_v48 = vld [vmem:[%s4504_s7 + $0x20] sm:$0xff] }
 0x1e4   :  { %v3430_v50 = vpack.c.bf16 %v2794_v49, %v2793_v48 }
 0x1e9   :  { %3068 = vmatmul.mubr.msk.f32.vlgmr.msra.gmra.mrb[14].mxu0 %vm653_vm2, %v2182_v54  ;;  %v2797_v54 = vld [vmem:[%s4504_s7 + $0x40] sm:$0xff] }
 0x1ea   :  { %3374 = vmatpush1.bf16.msra.mxu0 %v3373_v53  ;;  %2330 = vmatprep.mubr.f32.mxu0 %v3524_v30  ;;  %v3433_v53 = vpack.c.bf16 %v2796_v52, %v2795_v51 }
 0x1eb   :  { %3376 = vmatprep.subr.bf16.mxu0 %v3375_v56  ;;  %v2798_v56 = vld [vmem:[%s4504_s7 + $0x48] sm:$0xff] }
 0x1ec   :  { %v3436_v58 = vpack.c.bf16 %v2798_v56, %v2797_v54 }
 0x1f1   :  { %3073 = vmatmul.mubr.msk.f32.vlgmr.msra.gmra.mrb[14].mxu0 %vm653_vm2, %v640_v63  ;;  %v2802_v63 = vld [vmem:[%s4504_s7 + $0x68] sm:$0xff] }
 0x1f2   :  { %3378 = vmatpush1.bf16.msra.mxu0 %v3377_v46  ;;  %2411 = vmatprep.mubr.f32.mxu0 %v3524_v30  ;;  %v2801_v46 = vld [vmem:[%s4504_s7 + $0x60] sm:$0xff]  ;;  %s3526_s7 = smov [#allocation2]  }
 0x1f3   :  { %3380 = vmatprep.subr.bf16.mxu0 %v3379_v57  ;;  %v3442_v57 = vpack.c.bf16 %v2802_v63, %v2801_v46  ;;  %s2890_s15 = sshll.u32 %s3526_s7, 4  ;;  %s2891_s15 = int_to_ptr.vmem [resolvable:$true] %s2890_s15 }
 0x1f4   :  { %s3499_s16 = scalar_lea.vmem %s2891_s15, 32  ;;  %p3504_p1 = scmp.lt.s32.totalorder %s2891_s15, %s2891_s15 }
 0x1f5   :  { %p3500_p0 = scmp.ne.s32.totalorder %s2891_s15, %s3499_s16  ;;  %p3505_p2 = scmp.lt.s32.totalorder %s3499_s16, %s3499_s16 }
 0x1f7   :  { %p3506_p3 = por %p3505_p2, %p3504_p1 }
 0x1f9   :  { %3078 = vmatmul.mubr.msk.f32.vlgmr.msra.gmra.mrb[14].mxu0 %vm653_vm2, %v2344_v5  ;;  %p3507_p4 = pnand %p3506_p3, %p3500_p0 }
 0x1fa   :  { %3382 = vmatpush1.bf16.msra.mxu0 %v3381_v4  ;;  %2492 = vmatprep.mubr.f32.mxu0 %v3524_v30  ;;  %v3094_v4 = vld [vmem:[%s4503_s6] ss:$0 sm:$0xff] }
 0x1fb   :  { %3384 = vmatprep.subr.bf16.mxu0 %v3383_v6 }
 0x201   :  { %3083 = vmatmul.mubr.msk.f32.vlgmr.msra.gmra.mrb[14].mxu0 %vm653_vm2, %v2425_v13 }
 0x202   :  { %3386 = vmatpush1.bf16.msra.mxu0 %v3385_v11  ;;  %2573 = vmatprep.mubr.f32.mxu0 %v3524_v30 }
 0x203   :  { %3388 = vmatprep.subr.bf16.mxu0 %v3387_v14 }
 0x209   :  { %3088 = vmatmul.mubr.msk.f32.vlgmr.msra.gmra.mrb[14].mxu0 %vm653_vm2, %v2506_v18 }
 0x20a   :  { %3390 = vmatpush1.bf16.msra.mxu0 %v3389_v17  ;;  %2654 = vmatprep.mubr.f32.mxu0 %v3524_v30 }
 0x211   :  { %3093 = vmatmul.mubr.msk.f32.vlgmr.msra.gmra.mrb[14].mxu0 %vm653_vm2, %v641_v19 }
 0x2e4   :  { %v2656_v36 = vpop.f32.mrb[14].mxu0 }
 0x2e5   :  { %v2675_v37 = vadd.f32 %v2668_v34, %v2656_v36  ;;  %v2658_v60 = vpop.f32.mrb[15].mxu0 }
 0x2e6   :  { %v2676_v40 = vadd.f32 %v2672_v35, %v2658_v60 }
 0x2e7   :  { %v2677_v43 = vmax.f32 %v2675_v37, 0.0 }
 0x2e8   :  { %v2678_v41 = vmax.f32 %v2676_v40, 0.0 }
 0x2ea   :  { %2782 = vmatprep.mubr.f32.mxu1 %v2678_v41 }
 0x2eb   :  { %2783 = vmatmul.mubr.f32.vlgmr.msra.gmra.mrb[42].mxu1 %v2677_v43 }
 0x2ec   :  { %3425 = vmatpush3.bf16.msra.mxu1 %v3424_v42  ;;  %3180 = vmatprep.mubr.msk.f32.mxu1 %vm3525_vm3, %v3524_v30 }
 0x2ed   :  { %3426 = vmatprep.subr.bf16.mxu1 %v3523_v3 }
 0x2f0   :  { %3428 = vmatpush3.bf16.msra.mxu1 %v3427_v47 }
 0x2f1   :  { %3429 = vmatprep.subr.bf16.mxu1 %v3523_v3 }
 0x2f4   :  { %3431 = vmatpush3.bf16.msra.mxu1 %v3430_v50 }
 0x2f5   :  { %3432 = vmatprep.subr.bf16.mxu1 %v3523_v3 }
 0x2f8   :  { %3434 = vmatpush3.bf16.msra.mxu1 %v3433_v53 }
 0x2f9   :  { %3435 = vmatprep.subr.bf16.mxu1 %v3523_v3 }
 0x2fc   :  { %3437 = vmatpush3.bf16.msra.mxu1 %v3436_v58 }
 0x2fd   :  { %3438 = vmatprep.subr.bf16.mxu1 %v3523_v3 }
 0x300   :  { %3440 = vmatpush3.bf16.msra.mxu1 %v3439_v62 }
 0x301   :  { %3441 = vmatprep.subr.bf16.mxu1 %v3523_v3 }
 0x304   :  { %3443 = vmatpush3.bf16.msra.mxu1 %v3442_v57 }
 0x305   :  { %3444 = vmatprep.subr.bf16.mxu1 %v3523_v3 }
 0x308   :  { %3446 = vmatpush3.bf16.msra.mxu1 %v3445_v2 }
 0x3be   :  { %v3128_v7 = vpop.f32.mrb[42].mxu1 }
 0x3bf   :  { %v3129_v5 = vpop.f32.mrb[43].mxu1 }
 0x3c0   :  { %v3130_v3 = vadd.f32 %v3129_v5, %v3128_v7 }
 0x3c2   :  { %v2785_v6 = vadd.f32 %v3130_v3, %v3094_v4 }
 0x3c4   :  { %v2788_v8 = vmax.f32 %v2785_v6, 0.0 }
 0x3c6   :  { %3181 = vmatmul.mubr.f32.vlgmr.msra.gmra.mrb[44].mxu1 %v2788_v8 }
 0x499   :  { %v2878_v9 = vpop.f32.mrb[44].mxu1 }
 0x49a   :  { %v2879_v10 = vadd.f32 %v3095_v55, %v2878_v9  ;;  %v3182_v30 = vpop.f32.mrb[45].mxu1 }
 0x49c   :  { %2883 = vst.msk [vmem:[#allocation2] sm:$0x3] %vm2882_vm4, %v2879_v10 }
 0x49d   :  { %3510 = shalt.err (!%p3507_p4)
}
 0x49e   :  { %s3511_s18 = scalar_lea.hbm %s4506_s9, 32 }
 0x49f   :  { %p3512_p5 = scmp.ne.s32.totalorder %s4506_s9, %s3511_s18  ;;  %p3515_p6 = scmp.lt.u32.totalorder %s3511_s18, %s4506_s9 }
 0x4a1   :  { %p3517_p7 = pnand %p3515_p6, %p3512_p5 }
 0x4a3   :  { %3520 = shalt.err (!%p3517_p7)
}
 0x4a4   :  { %2893 = dma.vmem_to_hbm [thread:$0]  %s2891_s15, 32, %s4506_s9, [#allocation3]  }
 0x4a5   :  { %3521 = dma.done.wait [#allocation3], 32  }
 0x4a6   :  { %3522 = vsyncadd [#allocation3], 4294967264 }
 0x4a7   :  { %2897 = vsyncpa [#allocation3], 1 }

</bundles_post_ra>
